<compile_context>
chip_gen: v7x
topology: tpu7x:2x2x1
jax: 0.10.0
libtpu: 0.0.40
codegen_flags: <defaults>
</compile_context>

<pallas_src>
import functools

import numpy as np
import jax
import jax.numpy as jnp
from jax.experimental import pallas as pl
from jax.experimental.pallas import tpu as pltpu

SAMPLE_NUM = 256        # small stand-in for the module's sample_num=5000
TQ = 128                # query-point tile (lane width) for the chamfer kernel


def _round_up(x, m):
    return ((x + m - 1) // m) * m


# ----------------------------------------------------------------------------
# Pallas kernels
# ----------------------------------------------------------------------------
def _chamfer_kernel(xt_ref, xnt_ref, y_ref, yn_ref, y2_ref, ynn_ref, out_ref):
    """One (direction, query-tile) grid step of bidirectional chamfer.

    Query points live along lanes (TQ=128) so all per-query outputs are
    lane-dense; reference points live along sublanes.
    """
    xt = xt_ref[...]                 # (3, TQ)  query coords, transposed
    xnt = xnt_ref[...]               # (3, TQ)  query normals, transposed
    y = y_ref[...]                   # (M, 3)   reference coords
    yn = yn_ref[...]                 # (M, 3)   reference normals
    y2 = y2_ref[...]                 # (M, 1)   precomputed |y|^2   (hoisted)
    ynn = ynn_ref[...]               # (M, 1)   precomputed ||yn||  (hoisted)
    m = y.shape[0]

    # Pairwise squared distances, queries along lanes: (M, TQ).
    x2 = jnp.sum(xt * xt, axis=0, keepdims=True)                          # (1, TQ)
    yx = jax.lax.dot_general(y.astype(jnp.bfloat16), xt.astype(jnp.bfloat16),
                             (((1,), (0,)), ((), ())),
                             preferred_element_type=jnp.float32)          # (M, TQ)
    dist = jnp.maximum(y2 + x2 - 2.0 * yx, 0.0)   # clamp fp cancellation

    dmin = jnp.min(dist, axis=0, keepdims=True)                           # (1, TQ)

    # First-index argmin via iota trick -> one-hot selection mask (VPU only).
    iota = jax.lax.broadcasted_iota(jnp.int32, dist.shape, 0)
    idx = jnp.min(jnp.where(dist <= dmin, iota, jnp.int32(m)),
                  axis=0, keepdims=True)                                   # (1, TQ)
    sel = (iota == idx).astype(jnp.float32)                                # (M, TQ)

    # Lane-dense normal dot-product matrix on the MXU, masked sum on the VPU
    # (replaces the skinny sel @ yn gather matmul).
    cosmat = jax.lax.dot_general(yn.astype(jnp.bfloat16), xnt.astype(jnp.bfloat16),
                                 (((1,), (0,)), ((), ())),
                                 preferred_element_type=jnp.float32)       # (M, TQ)
    num = jnp.sum(sel * cosmat, axis=0, keepdims=True)                     # (1, TQ)
    nb = jnp.sum(sel * ynn, axis=0, keepdims=True)                         # (1, TQ)

    xn2 = jnp.sum(xnt * xnt, axis=0, keepdims=True)                        # (1, TQ)
    inv_na = jax.lax.rsqrt(jnp.maximum(xn2, 1e-12))                        # EUP
    inv_nb = pl.reciprocal(jnp.maximum(nb, 1e-6), approx=True)             # EUP
    cos = num * inv_na * inv_nb

    out_ref[...] = jnp.concatenate([dmin, cos], axis=0)                    # (2, TQ)


def _cot_laplacian_kernel(lt_ref, vt_full_ref, vt_row_ref, w_ref, out_ref):
    """Row-tiled || (L @ verts) * norm_w - verts ||_2 for one vertex tile.

    Transposed formulation: vertices run along lanes, so the per-vertex norm
    output is a lane-dense (1, TV) row.  lt_ref holds the columns of L^T that
    correspond to this tile's rows of L.
    """
    lv_t = jnp.dot(vt_full_ref[...], lt_ref[...],
                   preferred_element_type=jnp.float32)             # (3, TV)
    d = lv_t * w_ref[...] - vt_row_ref[...]                        # (3, TV)
    out_ref[...] = jnp.sqrt(jnp.sum(d * d, axis=0, keepdims=True))  # (1, TV)


# ----------------------------------------------------------------------------
# Pallas wrappers
# ----------------------------------------------------------------------------
def chamfer_bidirectional(px, nx, py, ny):
    """Fused two-direction chamfer.  Returns (dmin, cos), each (2, N):
    row 0 = src->trg, row 1 = trg->src."""
    n = px.shape[0]
    assert py.shape[0] == n, "both meshes are sampled with the same sample_num"
    n_pad = _round_up(n, TQ)          # handles sample_num not divisible by TQ
    n_tiles = n_pad // TQ

    def pad_rows(a):
        if a.shape[0] == n_pad:
            return a
        pad = jnp.zeros((n_pad - a.shape[0],) + a.shape[1:], a.dtype)
        return jnp.concatenate([a, pad], axis=0)

    X = jnp.stack([pad_rows(px), pad_rows(py)])                # (2, n_pad, 3)
    XN = jnp.stack([pad_rows(nx), pad_rows(ny)])
    XT = jnp.transpose(X, (0, 2, 1)).astype(jnp.float32)       # (2, 3, n_pad)
    XNT = jnp.transpose(XN, (0, 2, 1)).astype(jnp.float32)
    Y = jnp.stack([py, px]).astype(jnp.float32)                # (2, n, 3)
    YN = jnp.stack([ny, nx]).astype(jnp.float32)
    # Hoisted grid-invariant reductions:
    Y2 = jnp.sum(Y * Y, axis=-1, keepdims=True)                # (2, n, 1)
    YNN = jnp.maximum(jnp.linalg.norm(YN, axis=-1, keepdims=True), 1e-6)

    out = pl.pallas_call(
        _chamfer_kernel,
        out_shape=jax.ShapeDtypeStruct((2, 2, n_pad), jnp.float32),
        grid=(2, n_tiles),
        in_specs=[pl.BlockSpec((None, 3, TQ), lambda d, i: (d, 0, i)),
                  pl.BlockSpec((None, 3, TQ), lambda d, i: (d, 0, i)),
                  pl.BlockSpec((None, n, 3), lambda d, i: (d, 0, 0)),
                  pl.BlockSpec((None, n, 3), lambda d, i: (d, 0, 0)),
                  pl.BlockSpec((None, n, 1), lambda d, i: (d, 0, 0)),
                  pl.BlockSpec((None, n, 1), lambda d, i: (d, 0, 0))],
        out_specs=pl.BlockSpec((None, 2, TQ), lambda d, i: (d, 0, i)),
        compiler_params=pltpu.CompilerParams(
            dimension_semantics=("parallel", "parallel")),
    )(XT, XNT, Y, YN, Y2, YNN)

    dmin = out[:, 0, :n]
    cos = out[:, 1, :n]
    return dmin, cos


def cot_laplacian_per_vertex(L, verts, norm_w):
    """Per-vertex || (L @ verts) * norm_w - verts ||_2, row-tiled over vertices."""
    V = verts.shape[0]
    if V >= 128:
        TV = 128
        V_pad = _round_up(V, TV)
    else:
        V_pad = _round_up(V, 8)
        TV = V_pad
    n_tiles = V_pad // TV

    Lp = jnp.zeros((V_pad, V_pad), jnp.float32).at[:V, :V].set(L)
    Vp = jnp.zeros((V_pad, 3), jnp.float32).at[:V, :].set(verts)
    Wp = jnp.zeros((V_pad,), jnp.float32).at[:V].set(norm_w)

    LT = Lp.T            # (V_pad, V_pad): column tile j == rows of L for tile j
    VT = Vp.T            # (3, V_pad)
    WT = Wp[None, :]     # (1, V_pad)

    # TODO(synk): at production V (>2.5k) the dense (V,V) L should be replaced by a
    # sparse segment-sum / scalar-prefetched adjacency formulation; row tiling here
    # only caps VMEM (~2*TV*V*4 bytes of L resident) but keeps O(V^2) HBM traffic.
    out = pl.pallas_call(
        _cot_laplacian_kernel,
        out_shape=jax.ShapeDtypeStruct((1, V_pad), jnp.float32),
        grid=(n_tiles,),
        in_specs=[pl.BlockSpec((V_pad, TV), lambda i: (0, i)),
                  pl.BlockSpec((3, V_pad), lambda i: (0, 0)),
                  pl.BlockSpec((3, TV), lambda i: (0, i)),
                  pl.BlockSpec((1, TV), lambda i: (0, i))],
        out_specs=pl.BlockSpec((1, TV), lambda i: (0, i)),
        compiler_params=pltpu.CompilerParams(dimension_semantics=("parallel",)),
    )(LT, VT, VT, WT)
    return out[0, :V]


# ----------------------------------------------------------------------------
# JAX glue (sampling, cot weights, edge extraction) — mirrors pytorch3d semantics
# ----------------------------------------------------------------------------
def sample_points_from_mesh(key, verts, faces, num_samples):
    fv = verts[faces]                                     # (F, 3, 3)
    v0, v1, v2 = fv[:, 0], fv[:, 1], fv[:, 2]
    cross = jnp.cross(v1 - v0, v2 - v0)
    areas = 0.5 * jnp.linalg.norm(cross, axis=-1)
    k1, k2 = jax.random.split(key)
    face_idx = jax.random.categorical(k1, jnp.log(areas + 1e-12), shape=(num_samples,))
    uv = jax.random.uniform(k2, (num_samples, 2))
    su = jnp.sqrt(uv[:, 0])
    w0, w1, w2 = 1.0 - su, su * (1.0 - uv[:, 1]), su * uv[:, 1]
    pts = (w0[:, None] * v0[face_idx] + w1[:, None] * v1[face_idx]
           + w2[:, None] * v2[face_idx])
    fnorm = cross / (jnp.linalg.norm(cross, axis=-1, keepdims=True) + 1e-12)
    return pts.astype(jnp.float32), fnorm[face_idx].astype(jnp.float32)


def cot_laplacian_dense(verts, faces):
    fv = verts[faces]
    v0, v1, v2 = fv[:, 0], fv[:, 1], fv[:, 2]
    A = jnp.linalg.norm(v1 - v2, axis=1)
    B = jnp.linalg.norm(v0 - v2, axis=1)
    C = jnp.linalg.norm(v0 - v1, axis=1)
    s = 0.5 * (A + B + C)
    area = jnp.sqrt(jnp.clip(s * (s - A) * (s - B) * (s - C), 1e-12, None))
    A2, B2, C2 = A * A, B * B, C * C
    cota = (B2 + C2 - A2) / area
    cotb = (A2 + C2 - B2) / area
    cotc = (A2 + B2 - C2) / area
    cot = jnp.stack([cota, cotb, cotc], axis=1) / 4.0
    ii = faces[:, [1, 2, 0]].reshape(-1)
    jj = faces[:, [2, 0, 1]].reshape(-1)
    V = verts.shape[0]
    L = jnp.zeros((V, V), jnp.float32)
    L = L.at[ii, jj].add(cot.reshape(-1))
    return L + L.T


def unique_undirected_edges(faces_np):
    e = np.concatenate([faces_np[:, [0, 1]], faces_np[:, [1, 2]],
                        faces_np[:, [2, 0]]], axis=0)
    e = np.sort(e, axis=1)
    return np.unique(e, axis=0)                            # (E, 2)


def _nan_to_zero(x):
    return jnp.where(jnp.isnan(x), jnp.zeros_like(x), x)


# ----------------------------------------------------------------------------
# Mesh_loss equivalent (single jit-able forward)
# ----------------------------------------------------------------------------
def mesh_loss_forward(src_verts, trg_verts, faces, edges, edge_len_target,
                      loss_list, key):
    loss_dict = {}
    k1, k2 = jax.random.split(key)
    sample_scr, normals_scr = sample_points_from_mesh(k1, src_verts, faces, SAMPLE_NUM)
    sample_trg, normals_trg = sample_points_from_mesh(k2, trg_verts, faces, SAMPLE_NUM)

    # chamfer_distance(sample_scr, sample_trg, x_normals, y_normals) — both
    # directions fused into one pallas_call.
    dmin, cos = chamfer_bidirectional(sample_scr, normals_scr,
                                      sample_trg, normals_trg)
    loss_p0 = jnp.mean(dmin[0]) + jnp.mean(dmin[1])
    loss_n1 = jnp.mean(1.0 - jnp.abs(cos[0])) + jnp.mean(1.0 - jnp.abs(cos[1]))

    if 'loss_p0' in loss_list:
        loss_dict['loss_p0'] = _nan_to_zero(loss_p0)
    if 'loss_n1' in loss_list:
        loss_dict['loss_n1'] = _nan_to_zero(loss_n1)

    if 'loss_laplacian' in loss_list:
        L = cot_laplacian_dense(src_verts, faces)
        row_sum = jnp.sum(L, axis=1)
        norm_w = jnp.where(row_sum > 0, 1.0 / jnp.where(row_sum > 0, row_sum, 1.0), 0.0)
        per_vert = cot_laplacian_per_vertex(L, src_verts, norm_w.astype(jnp.float32))
        loss_dict['loss_laplacian'] = _nan_to_zero(jnp.mean(per_vert))

    if 'loss_edge' in loss_list:
        # Tiny VPU-only op over (E,3): plain jnp (XLA fuses it; a custom call
        # would be pure launch overhead).
        v0 = src_verts[edges[:, 0]]
        v1 = src_verts[edges[:, 1]]
        lengths = jnp.linalg.norm(v0 - v1, axis=-1)   # forward-only; add eps if grads needed
        loss_dict['loss_edge'] = _nan_to_zero(jnp.mean((lengths - edge_len_target) ** 2))

    # TODO(synk): mesh_normal_consistency (loss_consistency) needs face-adjacency
    # construction with no clean Pallas hot path; omitted.
    # TODO(synk): Rigid_Loss (loss_rigid) is an external module whose definition is
    # not given; omitted.
    return loss_dict


# ----------------------------------------------------------------------------
# main
# ----------------------------------------------------------------------------
if __name__ == "__main__":
    # Deterministic "standard" mesh: unit icosahedron (12 verts, 20 faces, 30 edges).
    phi = (1.0 + 5.0 ** 0.5) / 2.0
    verts_np = np.array([(-1, phi, 0), (1, phi, 0), (-1, -phi, 0), (1, -phi, 0),
                         (0, -1, phi), (0, 1, phi), (0, -1, -phi), (0, 1, -phi),
                         (phi, 0, -1), (phi, 0, 1), (-phi, 0, -1), (-phi, 0, 1)],
                        dtype=np.float32)
    verts_np /= np.linalg.norm(verts_np, axis=1, keepdims=True)
    faces_np = np.array([(0, 11, 5), (0, 5, 1), (0, 1, 7), (0, 7, 10), (0, 10, 11),
                         (1, 5, 9), (5, 11, 4), (11, 10, 2), (10, 7, 6), (7, 1, 8),
                         (3, 9, 4), (3, 4, 2), (3, 2, 6), (3, 6, 8), (3, 8, 9),
                         (4, 9, 5), (2, 4, 11), (6, 2, 10), (8, 6, 7), (9, 8, 1)],
                        dtype=np.int32)
    edges_np = unique_undirected_edges(faces_np)

    verts_std = jnp.asarray(verts_np)
    faces = jnp.asarray(faces_np)
    edges = jnp.asarray(edges_np)

    # "__init__" derived parameter: mean edge length of the standard mesh
    # (the cot-Laplacian connectivity of a manifold mesh is exactly its edge set).
    edge_len_target = jnp.mean(
        jnp.linalg.norm(verts_std[edges[:, 0]] - verts_std[edges[:, 1]], axis=-1))

    key = jax.random.PRNGKey(0)
    k_src, k_trg, k_sample = jax.random.split(key, 3)
    src_verts = verts_std + 0.05 * jax.random.normal(k_src, verts_std.shape, jnp.float32)
    trg_verts = 1.1 * verts_std + 0.05 * jax.random.normal(k_trg, verts_std.shape, jnp.float32)

    loss_list = {'loss_p0': 1.0, 'loss_n1': 1.0, 'loss_laplacian': 1.0, 'loss_edge': 1.0}

    # Single jitted forward: all glue fuses, one dispatch per call.
    fwd = jax.jit(functools.partial(mesh_loss_forward, loss_list=loss_list))
    losses = fwd(src_verts, trg_verts, faces, edges, edge_len_target, key=k_sample)
    losses = jax.block_until_ready(losses)

    for k in sorted(losses):
        assert np.isfinite(float(losses[k])), f"non-finite loss {k}"
    print("KERNEL_OK")
</pallas_src>

<mosaic_0001>
module attributes {stable_mosaic.version = 11 : i64} {
  func.func @_cot_laplacian_kernel(%arg0: i32, %arg1: memref<16x16xf32, #tpu.memory_space<vmem>>, %arg2: memref<3x16xf32, #tpu.memory_space<vmem>>, %arg3: memref<3x16xf32, #tpu.memory_space<vmem>>, %arg4: memref<1x16xf32, #tpu.memory_space<vmem>>, %arg5: memref<1x16xf32, #tpu.memory_space<vmem>>) attributes {dimension_semantics = [#tpu.dimension_semantics<parallel>], iteration_bounds = array<i64: 1>, scalar_prefetch = 0 : i64, scratch_operands = 0 : i64, tpu.core_type = #tpu.core_type<tc>, window_params = [{transform_indices = @transform_0, window_bounds = array<i64: 16, 16>}, {pipeline_mode = #tpu.pipeline_mode<synchronous>, transform_indices = @transform_1, window_bounds = array<i64: 3, 16>}, {transform_indices = @transform_2, window_bounds = array<i64: 3, 16>}, {transform_indices = @transform_3, window_bounds = array<i64: 1, 16>}, {transform_indices = @transform_4, window_bounds = array<i64: 1, 16>}]} {
    %c0 = arith.constant 0 : index
    %c0_0 = arith.constant 0 : index
    %0 = vector.load %arg2[%c0, %c0_0] : memref<3x16xf32, #tpu.memory_space<vmem>>, vector<3x16xf32>
    %c0_1 = arith.constant 0 : index
    %c0_2 = arith.constant 0 : index
    %1 = vector.load %arg1[%c0_1, %c0_2] : memref<16x16xf32, #tpu.memory_space<vmem>>, vector<16x16xf32>
    %cst = arith.constant dense<0.000000e+00> : vector<3x16xf32>
    %2 = tpu.matmul %0, %1, %cst {dimension_numbers = #tpu.dot_dimension_numbers<[1], [0], [0], [1], [0, 0, 1, 1], [], []>} : vector<3x16xf32>, vector<16x16xf32>, vector<3x16xf32> -> vector<3x16xf32>
    %c0_3 = arith.constant 0 : index
    %c0_4 = arith.constant 0 : index
    %3 = vector.load %arg4[%c0_3, %c0_4] : memref<1x16xf32, #tpu.memory_space<vmem>>, vector<1x16xf32>
    %4 = vector.broadcast %3 : vector<1x16xf32> to vector<3x16xf32>
    %5 = arith.mulf %2, %4 : vector<3x16xf32>
    %c0_5 = arith.constant 0 : index
    %c0_6 = arith.constant 0 : index
    %6 = vector.load %arg3[%c0_5, %c0_6] : memref<3x16xf32, #tpu.memory_space<vmem>>, vector<3x16xf32>
    %7 = arith.subf %5, %6 : vector<3x16xf32>
    %8 = arith.mulf %7, %7 : vector<3x16xf32>
    %cst_7 = arith.constant dense<0.000000e+00> : vector<16xf32>
    %9 = vector.multi_reduction <add>, %8, %cst_7 [0] : vector<3x16xf32> to vector<16xf32>
    %10 = vector.shape_cast %9 : vector<16xf32> to vector<1x16xf32>
    %11 = math.sqrt %10 : vector<1x16xf32>
    %c0_8 = arith.constant 0 : index
    %c0_9 = arith.constant 0 : index
    %12 = vector.load %arg5[%c0_8, %c0_9] : memref<1x16xf32, #tpu.memory_space<vmem>>, vector<1x16xf32>
    tpu.vector_store %arg5[%c0_8, %c0_9], %11 {strides = array<i32>} : memref<1x16xf32, #tpu.memory_space<vmem>>, vector<1x16xf32>,
    return
  }
  func.func @transform_0(%arg0: i32) -> (i32, i32) {
    %c0_i32 = arith.constant 0 : i32
    %c0_i32_0 = arith.constant 0 : i32
    return %c0_i32, %arg0 : i32, i32
  }
  func.func @transform_1(%arg0: i32) -> (i32, i32) {
    %c0_i32 = arith.constant 0 : i32
    %c0_i32_0 = arith.constant 0 : i32
    %c0_i32_1 = arith.constant 0 : i32
    return %c0_i32, %c0_i32_0 : i32, i32
  }
  func.func @transform_2(%arg0: i32) -> (i32, i32) {
    %c0_i32 = arith.constant 0 : i32
    %c0_i32_0 = arith.constant 0 : i32
    return %c0_i32, %arg0 : i32, i32
  }
  func.func @transform_3(%arg0: i32) -> (i32, i32) {
    %c0_i32 = arith.constant 0 : i32
    %c0_i32_0 = arith.constant 0 : i32
    return %c0_i32, %arg0 : i32, i32
  }
  func.func @transform_4(%arg0: i32) -> (i32, i32) {
    %c0_i32 = arith.constant 0 : i32
    %c0_i32_0 = arith.constant 0 : i32
    return %c0_i32, %arg0 : i32, i32
  }
}

module attributes {stable_mosaic.version = 11 : i64} {
  func.func @_chamfer_kernel(%arg0: i32, %arg1: i32, %arg2: memref<1x3x128xf32, #tpu.memory_space<vmem>>, %arg3: memref<1x3x128xf32, #tpu.memory_space<vmem>>, %arg4: memref<1x256x3xf32, #tpu.memory_space<vmem>>, %arg5: memref<1x256x3xf32, #tpu.memory_space<vmem>>, %arg6: memref<1x256x1xf32, #tpu.memory_space<vmem>>, %arg7: memref<1x256x1xf32, #tpu.memory_space<vmem>>, %arg8: memref<1x2x128xf32, #tpu.memory_space<vmem>>) attributes {dimension_semantics = [#tpu.dimension_semantics<parallel>, #tpu.dimension_semantics<parallel>], iteration_bounds = array<i64: 2, 2>, scalar_prefetch = 0 : i64, scratch_operands = 0 : i64, tpu.core_type = #tpu.core_type<tc>, window_params = [{transform_indices = @transform_0, window_bounds = array<i64: 1, 3, 128>}, {transform_indices = @transform_1, window_bounds = array<i64: 1, 3, 128>}, {transform_indices = @transform_2, window_bounds = array<i64: 1, 256, 3>}, {transform_indices = @transform_3, window_bounds = array<i64: 1, 256, 3>}, {transform_indices = @transform_4, window_bounds = array<i64: 1, 256, 1>}, {transform_indices = @transform_5, window_bounds = array<i64: 1, 256, 1>}, {transform_indices = @transform_6, window_bounds = array<i64: 1, 2, 128>}]} {
    %c0 = arith.constant 0 : index
    %c0_0 = arith.constant 0 : index
    %c0_1 = arith.constant 0 : index
    %0 = vector.load %arg2[%c0, %c0_0, %c0_1] : memref<1x3x128xf32, #tpu.memory_space<vmem>>, vector<1x3x128xf32>
    %1 = vector.shape_cast %0 : vector<1x3x128xf32> to vector<3x128xf32>
    %c0_2 = arith.constant 0 : index
    %c0_3 = arith.constant 0 : index
    %c0_4 = arith.constant 0 : index
    %2 = vector.load %arg3[%c0_2, %c0_3, %c0_4] : memref<1x3x128xf32, #tpu.memory_space<vmem>>, vector<1x3x128xf32>
    %3 = vector.shape_cast %2 : vector<1x3x128xf32> to vector<3x128xf32>
    %c0_5 = arith.constant 0 : index
    %c0_6 = arith.constant 0 : index
    %c0_7 = arith.constant 0 : index
    %4 = vector.load %arg4[%c0_5, %c0_6, %c0_7] : memref<1x256x3xf32, #tpu.memory_space<vmem>>, vector<1x256x3xf32>
    %5 = vector.shape_cast %4 : vector<1x256x3xf32> to vector<256x3xf32>
    %c0_8 = arith.constant 0 : index
    %c0_9 = arith.constant 0 : index
    %c0_10 = arith.constant 0 : index
    %6 = vector.load %arg5[%c0_8, %c0_9, %c0_10] : memref<1x256x3xf32, #tpu.memory_space<vmem>>, vector<1x256x3xf32>
    %7 = vector.shape_cast %6 : vector<1x256x3xf32> to vector<256x3xf32>
    %c0_11 = arith.constant 0 : index
    %c0_12 = arith.constant 0 : index
    %c0_13 = arith.constant 0 : index
    %8 = vector.load %arg6[%c0_11, %c0_12, %c0_13] : memref<1x256x1xf32, #tpu.memory_space<vmem>>, vector<1x256x1xf32>
    %9 = vector.shape_cast %8 : vector<1x256x1xf32> to vector<256x1xf32>
    %c0_14 = arith.constant 0 : index
    %c0_15 = arith.constant 0 : index
    %c0_16 = arith.constant 0 : index
    %10 = vector.load %arg7[%c0_14, %c0_15, %c0_16] : memref<1x256x1xf32, #tpu.memory_space<vmem>>, vector<1x256x1xf32>
    %11 = vector.shape_cast %10 : vector<1x256x1xf32> to vector<256x1xf32>
    %12 = arith.mulf %1, %1 : vector<3x128xf32>
    %cst = arith.constant dense<0.000000e+00> : vector<128xf32>
    %13 = vector.multi_reduction <add>, %12, %cst [0] : vector<3x128xf32> to vector<128xf32>
    %14 = vector.shape_cast %13 : vector<128xf32> to vector<1x128xf32>
    %15 = arith.truncf %5 : vector<256x3xf32> to vector<256x3xbf16>
    %16 = arith.truncf %1 : vector<3x128xf32> to vector<3x128xbf16>
    %cst_17 = arith.constant dense<0.000000e+00> : vector<256x128xf32>
    %17 = tpu.matmul %15, %16, %cst_17 {dimension_numbers = #tpu.dot_dimension_numbers<[1], [0], [0], [1], [0, 0, 1, 1], [], []>} : vector<256x3xbf16>, vector<3x128xbf16>, vector<256x128xf32> -> vector<256x128xf32>
    %18 = vector.broadcast %9 : vector<256x1xf32> to vector<256x128xf32>
    %19 = vector.broadcast %14 : vector<1x128xf32> to vector<256x128xf32>
    %20 = arith.addf %18, %19 : vector<256x128xf32>
    %cst_18 = arith.constant 2.000000e+00 : f32
    %21 = vector.broadcast %cst_18 : f32 to vector<256x128xf32>
    %22 = arith.mulf %21, %17 : vector<256x128xf32>
    %23 = arith.subf %20, %22 : vector<256x128xf32>
    %cst_19 = arith.constant 0.000000e+00 : f32
    %24 = vector.broadcast %cst_19 : f32 to vector<256x128xf32>
    %25 = arith.maximumf %23, %24 : vector<256x128xf32>
    %cst_20 = arith.constant dense<0x7F800000> : vector<128xf32>
    %26 = vector.multi_reduction <minimumf>, %25, %cst_20 [0] : vector<256x128xf32> to vector<128xf32>
    %27 = vector.shape_cast %26 : vector<128xf32> to vector<1x128xf32>
    %28 = tpu.iota {dimensions = array<i32: 0>} : vector<256x128xi32>
    %29 = vector.broadcast %27 : vector<1x128xf32> to vector<256x128xf32>
    %30 = arith.cmpf ole, %25, %29 : vector<256x128xf32>
    %c256_i32 = arith.constant 256 : i32
    %31 = vector.broadcast %c256_i32 : i32 to vector<256x128xi32>
    %32 = arith.select %30, %28, %31 : vector<256x128xi1>, vector<256x128xi32>
    %cst_21 = arith.constant dense<2147483647> : vector<128xi32>
    %33 = vector.multi_reduction <minsi>, %32, %cst_21 [0] : vector<256x128xi32> to vector<128xi32>
    %34 = vector.shape_cast %33 : vector<128xi32> to vector<1x128xi32>
    %35 = vector.broadcast %34 : vector<1x128xi32> to vector<256x128xi32>
    %36 = arith.cmpi eq, %28, %35 : vector<256x128xi32>
    %37 = arith.extui %36 : vector<256x128xi1> to vector<256x128xi32>
    %38 = arith.sitofp %37 : vector<256x128xi32> to vector<256x128xf32>
    %39 = arith.truncf %7 : vector<256x3xf32> to vector<256x3xbf16>
    %40 = arith.truncf %3 : vector<3x128xf32> to vector<3x128xbf16>
    %cst_22 = arith.constant dense<0.000000e+00> : vector<256x128xf32>
    %41 = tpu.matmul %39, %40, %cst_22 {dimension_numbers = #tpu.dot_dimension_numbers<[1], [0], [0], [1], [0, 0, 1, 1], [], []>} : vector<256x3xbf16>, vector<3x128xbf16>, vector<256x128xf32> -> vector<256x128xf32>
    %42 = arith.mulf %38, %41 : vector<256x128xf32>
    %cst_23 = arith.constant dense<0.000000e+00> : vector<128xf32>
    %43 = vector.multi_reduction <add>, %42, %cst_23 [0] : vector<256x128xf32> to vector<128xf32>
    %44 = vector.shape_cast %43 : vector<128xf32> to vector<1x128xf32>
    %45 = vector.broadcast %11 : vector<256x1xf32> to vector<256x128xf32>
    %46 = arith.mulf %38, %45 : vector<256x128xf32>
    %cst_24 = arith.constant dense<0.000000e+00> : vector<128xf32>
    %47 = vector.multi_reduction <add>, %46, %cst_24 [0] : vector<256x128xf32> to vector<128xf32>
    %48 = vector.shape_cast %47 : vector<128xf32> to vector<1x128xf32>
    %49 = arith.mulf %3, %3 : vector<3x128xf32>
    %cst_25 = arith.constant dense<0.000000e+00> : vector<128xf32>
    %50 = vector.multi_reduction <add>, %49, %cst_25 [0] : vector<3x128xf32> to vector<128xf32>
    %51 = vector.shape_cast %50 : vector<128xf32> to vector<1x128xf32>
    %cst_26 = arith.constant 9.99999996E-13 : f32
    %52 = vector.broadcast %cst_26 : f32 to vector<1x128xf32>
    %53 = arith.maximumf %51, %52 : vector<1x128xf32>
    %54 = math.rsqrt %53 : vector<1x128xf32>
    %cst_27 = arith.constant 9.99999997E-7 : f32
    %55 = vector.broadcast %cst_27 : f32 to vector<1x128xf32>
    %56 = arith.maximumf %48, %55 : vector<1x128xf32>
    %57 = tpu.reciprocal %56 {approx = true} : vector<1x128xf32> -> vector<1x128xf32>
    %58 = arith.mulf %44, %54 : vector<1x128xf32>
    %59 = arith.mulf %58, %57 : vector<1x128xf32>
    %60 = tpu.concatenate %27, %59 in 0 : vector<1x128xf32>, vector<1x128xf32> -> vector<2x128xf32>
    %c0_28 = arith.constant 0 : index
    %c0_29 = arith.constant 0 : index
    %c0_30 = arith.constant 0 : index
    %61 = vector.load %arg8[%c0_28, %c0_29, %c0_30] : memref<1x2x128xf32, #tpu.memory_space<vmem>>, vector<1x2x128xf32>
    %62 = vector.shape_cast %61 : vector<1x2x128xf32> to vector<2x128xf32>
    %63 = vector.shape_cast %60 : vector<2x128xf32> to vector<1x2x128xf32>
    tpu.vector_store %arg8[%c0_28, %c0_29, %c0_30], %63 {strides = array<i32>} : memref<1x2x128xf32, #tpu.memory_space<vmem>>, vector<1x2x128xf32>,
    return
  }
  func.func @transform_0(%arg0: i32, %arg1: i32) -> (i32, i32, i32) {
    %c0_i32 = arith.constant 0 : i32
    %c0_i32_0 = arith.constant 0 : i32
    return %arg0, %c0_i32, %arg1 : i32, i32, i32
  }
  func.func @transform_1(%arg0: i32, %arg1: i32) -> (i32, i32, i32) {
    %c0_i32 = arith.constant 0 : i32
    %c0_i32_0 = arith.constant 0 : i32
    return %arg0, %c0_i32, %arg1 : i32, i32, i32
  }
  func.func @transform_2(%arg0: i32, %arg1: i32) -> (i32, i32, i32) {
    %c0_i32 = arith.constant 0 : i32
    %c0_i32_0 = arith.constant 0 : i32
    %c0_i32_1 = arith.constant 0 : i32
    return %arg0, %c0_i32, %c0_i32_0 : i32, i32, i32
  }
  func.func @transform_3(%arg0: i32, %arg1: i32) -> (i32, i32, i32) {
    %c0_i32 = arith.constant 0 : i32
    %c0_i32_0 = arith.constant 0 : i32
    %c0_i32_1 = arith.constant 0 : i32
    return %arg0, %c0_i32, %c0_i32_0 : i32, i32, i32
  }
  func.func @transform_4(%arg0: i32, %arg1: i32) -> (i32, i32, i32) {
    %c0_i32 = arith.constant 0 : i32
    %c0_i32_0 = arith.constant 0 : i32
    %c0_i32_1 = arith.constant 0 : i32
    return %arg0, %c0_i32, %c0_i32_0 : i32, i32, i32
  }
  func.func @transform_5(%arg0: i32, %arg1: i32) -> (i32, i32, i32) {
    %c0_i32 = arith.constant 0 : i32
    %c0_i32_0 = arith.constant 0 : i32
    %c0_i32_1 = arith.constant 0 : i32
    return %arg0, %c0_i32, %c0_i32_0 : i32, i32, i32
  }
  func.func @transform_6(%arg0: i32, %arg1: i32) -> (i32, i32, i32) {
    %c0_i32 = arith.constant 0 : i32
    %c0_i32_0 = arith.constant 0 : i32
    return %arg0, %c0_i32, %arg1 : i32, i32, i32
  }
}

</mosaic_0001>

<bundles_post_ra>
// kernel: mesh_loss_forward.2
= control target key start
LH: loop header
LB: loop body
LE: loop exit
PB: predicated region body
PF: predicated region fallthrough
CT: control target
= control target key end

     0   :  { %v146_v0 = vmov 0.0|0.0   ;;  %vm147_vm0 = vmmov 0   ;;  %v148_v3 = vmov 0.0   ;;  %vm20_vm1 = vcmask 130048   ;;  %s192_s0 = inlined_call_operand.vmem [shape: f32[16,16], index: 0, kind: input, shape index: {}]   ;;  %s193_s1 = inlined_call_operand.vmem [shape: f32[3,16], index: 1, kind: input, shape index: {}, may-alias: {1,2}]   ;;  %s194_s3 = inlined_call_operand.vmem [shape: f32[1,16], index: 3, kind: input, shape index: {}]   ;;  %s195_s2 = inlined_call_operand.vmem [shape: f32[3,16], index: 2, kind: input, shape index: {}, may-alias: {1,2}]   ;;  %s196_s4 = inlined_call_operand.vmem [shape: f32[1,16], index: 4, kind: output, shape index: {}]  }
   0x1   :  { %138 = vmatprep.subr.bf16.mxu0 %v146_v0  ;;  %v18_v1 = vld [vmem:[%s192_s0] sm:$0xff]  ;;  %v19_v2 = vld [vmem:[%s192_s0 + $0x8] sm:$0xff]  ;;  %135 = vmatprep.mubr.msk.f32.mxu0 %vm147_vm0, %v148_v3  ;;  %vm105_vm2 = vcmask 124928   ;;  %vm120_vm4 = vcmask 122880  }
   0x2   :  { %v139_v4 = vpack.c.bf16 %v19_v2, %v18_v1  ;;  %v17_v5 = vld [vmem:[%s193_s1] sm:$0x7] }
   0x3   :  { %v127_v6 = vld [vmem:[%s194_s3] ss:$0 sm:$0xff] }
   0x4   :  { %140 = vmatpush3.bf16.msra.mxu0 %v139_v4  ;;  %v102_v8 = vld [vmem:[%s195_s2] sm:$0x7] }
   0x7   :  { %136 = vmatmul.mubr.msk.f32.vlgmr.msra.gmra.mrb[0].mxu0 %vm20_vm1, %v17_v5 }
  0xda   :  { %v90_v7 = vpop.f32.mrb[0].mxu0 }
  0xdb   :  { %v101_v9 = vmul.f32 %v127_v6, %v90_v7  ;;  %v137_v10 = vpop.f32.mrb[1].mxu0 }
  0xdd   :  { %v103_v11 = vsub.f32 %v101_v9, %v102_v8 }
  0xdf   :  { %v104_v12 = vmul.f32 %v103_v11, %v103_v11 }
  0xe1   :  { %v106_v13 = vsel %vm105_vm2, %v104_v12, 0.0 }
  0xe2   :  { %v107_v14 = vrot.slane %v106_v13, 4 }
  0xe4   :  { %v108_v15 = vadd.f32 %v107_v14, %v106_v13 }
  0xe6   :  { %v109_v16 = vrot.slane %v108_v15, 2 }
  0xe8   :  { %v110_v17 = vadd.f32 %v109_v16, %v108_v15 }
  0xea   :  { %v111_v18 = vrot.slane %v110_v17, 1 }
  0xec   :  { %v112_v19 = vadd.f32 %v111_v18, %v110_v17 }
  0xee   :  { %144 = vrsqrt.f32 %v112_v19  ;;  %vm115_vm3 = vcmp.eq.f32.partialorder %v112_v19, inf  ;;  %v118_v22 = vand.u32 2147483648, %v112_v19  ;;  %vm117_vm5 = vcmp.eq.f32.partialorder %v112_v19, 0.0 }
  0xf8   :  { %v145_v20 = vpop.eup %144 }
  0xf9   :  { %v114_v21 = vmul.f32 %v145_v20, %v112_v19 }
  0xfb   :  { %v116_v23 = vsel %vm115_vm3, %v112_v19, %v114_v21 }
  0xfc   :  { %v119_v24 = vsel %vm117_vm5, %v118_v22, %v116_v23 }
  0xfd   :  { %121 = vst.msk [vmem:[%s196_s4] sm:$0x1] %vm120_vm4, %v119_v24 }

// kernel: mesh_loss_forward.3
= control target key start
LH: loop header
LB: loop body
LE: loop exit
PB: predicated region body
PF: predicated region fallthrough
CT: control target
= control target key end

     0   :  { %s2370_s21 = smov 0   ;;  %s2372_s22 = smov 0   ;;  %s3364_s0 = inlined_call_operand.vmem [shape: f32[2,3,256], index: 0, kind: input, shape index: {}]   ;;  %s3365_s1 = inlined_call_operand.vmem [shape: f32[2,3,256], index: 1, kind: input, shape index: {}]   ;;  %s3366_s2 = inlined_call_operand.vmem [shape: f32[2,256,3], index: 2, kind: input, shape index: {}]   ;;  %s3367_s3 = inlined_call_operand.vmem [shape: f32[2,256,3], index: 3, kind: input, shape index: {}]   ;;  %s3368_s4 = inlined_call_operand.vmem [shape: f32[2,256,1], index: 4, kind: input, shape index: {}]   ;;  %s3369_s5 = inlined_call_operand.vmem [shape: f32[2,256,1], index: 5, kind: input, shape index: {}]   ;;  %s3370_s6 = inlined_call_operand.vmem [shape: f32[2,2,256], index: 6, kind: output, shape index: {}]  }
   0x1   :  { %s2374_s23 = smov 0   ;;  %s2376_s24 = smov 0  }
   0x2   :  { %s2378_s25 = smov 0  }
   0x3 LB: > { %s25_s26 = sadd.s32 1, %s2322_s23  ;;  %s28_s27 = sadd.s32 1, %s2326_s24  ;;  %s2330_s25 = sphi %s2378_s25, %s16_s25   ;;  %s2326_s24 = sphi %s2376_s24, %s3507_s24   ;;  %s2322_s23 = sphi %s2374_s23, %s3506_s23   ;;  %s2318_s22 = sphi %s2372_s22, %s3505_s22   ;;  %s2314_s21 = sphi %s2370_s21, %s3504_s21  }
   0x4   : > { %p26_p0 = scmp.ge.s32.totalorder %s25_s26, 2  ;;  %p2056_p1 = scmp.ge.s32.totalorder %s2330_s25, 1 }
   0x5   : > { %p286_p2 = scmp.lt.s32.totalorder %s2330_s25, 5 }
   0x6   : > { %s3509_s26 = smov (%p26_p0, %s25_s26), 0  ;;  %s3511_s27 = smov (!%p26_p0, %s28_s27), %s2326_s24 }
   0x7   : > { %p287_p3 = pnand %p2056_p1, %p286_p2  ;;  %p30_p4 = scmp.ge.s32.totalorder %s3511_s27, 2 }
   0x9   : > { %s3513_s27 = smov (%p30_p4, %s3511_s27), 0  ;;  %290 = sbr.rel (%p287_p3) target bundleno = 470 (0x1d6), region = 44 }
  0x10   : > { %p350_p5 = scmp.lt.s32.totalorder %s2318_s22, 1  ;;  %p352_p6 = scmp.lt.s32.totalorder %s2314_s21, 1  ;;  %v2332_v0 = vmov 0   ;;  %vm3374_vm0 = vcmask 1040384   ;;  %vm601_vm1 = vcmask 1041408   ;;  %v2333_v1 = vmov 65535  }
  0x11   : > { %2287 = vset.pattern.permute.xlu1 %v2332_v0  ;;  %2286 = vset.pattern.permute.xlu0 %v2332_v0  ;;  %v602_v2 = vsel %vm3374_vm0, 4294967295, %v2333_v1  ;;  %vm551_vm2 = vcmask 23552   ;;  %vm526_vm3 = vcmask 1042432  }
  0x12   : > { %s3515_s22 = smov (!%p350_p5, %s2318_s22), 1  ;;  %s3517_s21 = smov (!%p352_p6, %s2314_s21), 1  ;;  %v603_v8 = vsel %vm601_vm1, %v602_v2, 0 }
  0x13   : > { %s2400_s28 = sshll.u32 %s3515_s22, 8  ;;  %s2057_s29 = sshll.u32 %s3515_s22, 1 }
  0x14   : > { %s2406_s8 = scalar_lea.vmem %s3368_s4, %s2400_s28  ;;  %s2408_s9 = sadd.s32 %s2057_s29, %s3517_s21 }
  0x15   : > { %v463_v3 = vld [vmem:[%s2406_s8 + $0x10] sm:$0xff]  ;;  %v461_v4 = vld [vmem:[%s2406_s8] sm:$0xff]  ;;  %s2058_s10 = sshll.u32 %s2408_s9, 2  ;;  %v464_v5 = vld [vmem:[%s2406_s8 + $0x18] sm:$0xff]  ;;  %s2427_s16 = scalar_lea.vmem %s3366_s2, %s2400_s28 }
  0x16   : > { %780 = vperm.xlu1 %2287, %v463_v3   ;;  %770 = vperm.xlu0 %2286, %v461_v4   ;;  %s357_s13 = scalar_lea.vmem %s3364_s0, %s2058_s10  ;;  %v462_v6 = vld [vmem:[%s2406_s8 + $0x8] sm:$0xff]  ;;  %v397_v10 = vld [vmem:[%s2427_s16] sm:$0xff]  ;;  %v399_v13 = vld [vmem:[%s2427_s16 + $0x10] sm:$0xff]  ;;  %s365_s19 = scalar_lea.vmem %s3365_s1, %s2058_s10 }
  0x17   : > { %v2421_v7 = vld [vmem:[%s357_s13] sm:$0x7]  ;;  %v398_v11 = vld [vmem:[%s2427_s16 + $0x8] sm:$0xff]  ;;  %v400_v14 = vld [vmem:[%s2427_s16 + $0x18] sm:$0xff]  ;;  %s2462_s22 = scalar_lea.vmem %s3367_s3, %s2400_s28  ;;  %s2552_s7 = scalar_lea.vmem %s3369_s5, %s2400_s28 }
  0x18   : > { %v550_v9 = vpack.c.bf16 %v2421_v7, %v2421_v7  ;;  %v534_v12 = vpack.c.bf16 %v398_v11, %v397_v10  ;;  %v401_v16 = vld [vmem:[%s2427_s16 + $0x20] sm:$0xff]  ;;  %v402_v17 = vld [vmem:[%s2427_s16 + $0x28] sm:$0xff]  ;;  %v535_v20 = vpack.c.bf16 %v400_v14, %v399_v13  ;;  %v468_v22 = vld [vmem:[%s2406_s8 + $0x38] sm:$0xff]  ;;  %s2070_s28 = sshll.u32 %s2408_s9, 1 }
  0x19   : > { %v466_v18 = vld [vmem:[%s2406_s8 + $0x28] sm:$0xff]  ;;  %v465_v19 = vld [vmem:[%s2406_s8 + $0x20] sm:$0xff]  ;;  %v536_v21 = vpack.c.bf16 %v402_v17, %v401_v16  ;;  %v467_v23 = vld [vmem:[%s2406_s8 + $0x30] sm:$0xff]  ;;  %s393_s11 = scalar_lea.vmem %s3370_s6, %s2070_s28 }
  0x1a   : > { %785 = vperm.xlu1 %2287, %v464_v5   ;;  %775 = vperm.xlu0 %2286, %v462_v6   ;;  %v605_v15 = vand.u32 %v603_v8, %v550_v9  ;;  %v403_v24 = vld [vmem:[%s2427_s16 + $0x30] sm:$0xff]  ;;  %v404_v25 = vld [vmem:[%s2427_s16 + $0x38] sm:$0xff]  ;;  %v405_v26 = vld [vmem:[%s2427_s16 + $0x40] sm:$0xff] }
  0x1b   : > { %2177 = vmatprep.mubr.msk.bf16.mxu0 %vm551_vm2, %v534_v12  ;;  %v406_v27 = vld [vmem:[%s2427_s16 + $0x48] sm:$0xff]  ;;  %v469_v29 = vld [vmem:[%s2406_s8 + $0x40] sm:$0xff]  ;;  %v537_v30 = vpack.c.bf16 %v404_v25, %v403_v24  ;;  %v472_v32 = vld [vmem:[%s2406_s8 + $0x58] sm:$0xff] }
  0x1c   : > { %2175 = vmatprep.subr.bf16.mxu0 %v605_v15  ;;  %v470_v28 = vld [vmem:[%s2406_s8 + $0x48] sm:$0xff]  ;;  %v538_v31 = vpack.c.bf16 %v406_v27, %v405_v26  ;;  %v471_v33 = vld [vmem:[%s2406_s8 + $0x50] sm:$0xff]  ;;  %v408_v35 = vld [vmem:[%s2427_s16 + $0x58] sm:$0xff] }
  0x1d   : > { %2176 = vmatpush3.bf16.msra.mxu0 %v605_v15  ;;  %v407_v34 = vld [vmem:[%s2427_s16 + $0x50] sm:$0xff]  ;;  %v409_v36 = vld [vmem:[%s2427_s16 + $0x60] sm:$0xff]  ;;  %v410_v37 = vld [vmem:[%s2427_s16 + $0x68] sm:$0xff] }
  0x1e   : > { %795 = vperm.xlu1 %2287, %v466_v18   ;;  %790 = vperm.xlu0 %2286, %v465_v19   ;;  %v396_v38 = vld [vmem:[%s365_s19] sm:$0x7]  ;;  %v474_v39 = vld [vmem:[%s2406_s8 + $0x68] sm:$0xff]  ;;  %v539_v44 = vpack.c.bf16 %v408_v35, %v407_v34  ;;  %v540_v46 = vpack.c.bf16 %v410_v37, %v409_v36  ;;  %v431_v50 = vld [vmem:[%s2462_s22 + $0x10] sm:$0xff] }
  0x1f   : > { %v473_v40 = vld [vmem:[%s2406_s8 + $0x60] sm:$0xff]  ;;  %v1373_v41 = vpack.c.bf16 %v396_v38, %v396_v38  ;;  %v1884_v42 = vmul.f32 %v396_v38, %v396_v38  ;;  %v430_v45 = vld [vmem:[%s2462_s22 + $0x8] sm:$0xff]  ;;  %v432_v51 = vld [vmem:[%s2462_s22 + $0x18] sm:$0xff] }
  0x20   : > { %2178 = vmatmul.mubr.msk.bf16.vlgmr.msra.gmra.mrb[0].mxu0 %vm551_vm2, %v535_v20  ;;  %v429_v43 = vld [vmem:[%s2462_s22] sm:$0xff]  ;;  %v434_v53 = vld [vmem:[%s2462_s22 + $0x28] sm:$0xff]  ;;  %v476_v54 = vld [vmem:[%s2406_s8 + $0x78] sm:$0xff]  ;;  %v1358_v56 = vpack.c.bf16 %v432_v51, %v431_v50 }
  0x21   : > { %2181 = vmatprep.mubr.msk.bf16.mxu0 %vm551_vm2, %v536_v21  ;;  %v1423_v47 = vand.u32 %v1373_v41, %v603_v8  ;;  %v2474_v48 = vsel %vm526_vm3, %v1884_v42, 0.0  ;;  %v1357_v49 = vpack.c.bf16 %v430_v45, %v429_v43  ;;  %v433_v52 = vld [vmem:[%s2462_s22 + $0x20] sm:$0xff]  ;;  %v475_v55 = vld [vmem:[%s2406_s8 + $0x70] sm:$0xff]  ;;  %v412_v59 = vld [vmem:[%s2427_s16 + $0x78] sm:$0xff] }
  0x22   : > { %805 = vperm.xlu1 %2287, %v468_v22   ;;  %800 = vperm.xlu0 %2286, %v467_v23   ;;  %3388 = vst [vmem:[#allocation2_spill] sm:$0xff] %v2474_v48  ;;  %v1359_v57 = vpack.c.bf16 %v434_v53, %v433_v52  ;;  %v411_v58 = vld [vmem:[%s2427_s16 + $0x70] sm:$0xff]  ;;  %v413_v60 = vld [vmem:[%s2427_s16 + $0x80] sm:$0xff]  ;;  %v414_v61 = vld [vmem:[%s2427_s16 + $0x88] sm:$0xff] }
  0x23   : > { %2209 = vmatprep.subr.bf16.mxu1 %v1423_v47  ;;  %2211 = vmatprep.mubr.msk.bf16.mxu1 %vm551_vm2, %v1357_v49  ;;  %v478_v62 = vld [vmem:[%s2406_s8 + $0x88] sm:$0xff]  ;;  %v477_v63 = vld [vmem:[%s2406_s8 + $0x80] sm:$0xff]  ;;  %v541_v0 = vpack.c.bf16 %v412_v59, %v411_v58  ;;  %v435_v1 = vld [vmem:[%s2462_s22 + $0x30] sm:$0xff]  ;;  %v542_v3 = vpack.c.bf16 %v414_v61, %v413_v60 }
  0x24   : > { %2210 = vmatpush3.bf16.msra.mxu1 %v1423_v47  ;;  %v436_v2 = vld [vmem:[%s2462_s22 + $0x38] sm:$0xff]  ;;  %v437_v4 = vld [vmem:[%s2462_s22 + $0x40] sm:$0xff]  ;;  %v438_v5 = vld [vmem:[%s2462_s22 + $0x48] sm:$0xff] }
  0x25   : > { %v480_v6 = vld [vmem:[%s2406_s8 + $0x98] sm:$0xff]  ;;  %v479_v8 = vld [vmem:[%s2406_s8 + $0x90] sm:$0xff]  ;;  %v1360_v9 = vpack.c.bf16 %v436_v2, %v435_v1  ;;  %v1361_v10 = vpack.c.bf16 %v438_v5, %v437_v4  ;;  %v417_v13 = vld [vmem:[%s2427_s16 + $0xa0] sm:$0xff] }
  0x26   : > { %815 = vperm.xlu1 %2287, %v470_v28   ;;  %810 = vperm.xlu0 %2286, %v469_v29   ;;  %v415_v11 = vld [vmem:[%s2427_s16 + $0x90] sm:$0xff]  ;;  %v416_v12 = vld [vmem:[%s2427_s16 + $0x98] sm:$0xff]  ;;  %v418_v14 = vld [vmem:[%s2427_s16 + $0xa8] sm:$0xff] }
  0x27   : > { %2212 = vmatmul.mubr.msk.bf16.vlgmr.msra.gmra.mrb[0].mxu1 %vm551_vm2, %v1358_v56  ;;  %v482_v15 = vld [vmem:[%s2406_s8 + $0xa8] sm:$0xff]  ;;  %v481_v16 = vld [vmem:[%s2406_s8 + $0xa0] sm:$0xff]  ;;  %v543_v17 = vpack.c.bf16 %v416_v12, %v415_v11  ;;  %v439_v18 = vld [vmem:[%s2462_s22 + $0x50] sm:$0xff]  ;;  %v544_v20 = vpack.c.bf16 %v418_v14, %v417_v13 }
  0x28   : > { %2182 = vmatmul.mubr.msk.bf16.gmra.mrb[4].mxu0 %vm551_vm2, %v537_v30  ;;  %2215 = vmatprep.mubr.msk.bf16.mxu1 %vm551_vm2, %v1359_v57  ;;  %v440_v19 = vld [vmem:[%s2462_s22 + $0x58] sm:$0xff]  ;;  %v441_v21 = vld [vmem:[%s2462_s22 + $0x60] sm:$0xff]  ;;  %v442_v22 = vld [vmem:[%s2462_s22 + $0x68] sm:$0xff] }
  0x29   : > { %2185 = vmatprep.mubr.msk.bf16.mxu0 %vm551_vm2, %v538_v31  ;;  %v484_v23 = vld [vmem:[%s2406_s8 + $0xb8] sm:$0xff]  ;;  %v483_v24 = vld [vmem:[%s2406_s8 + $0xb0] sm:$0xff]  ;;  %v1362_v25 = vpack.c.bf16 %v440_v19, %v439_v18  ;;  %v1363_v26 = vpack.c.bf16 %v442_v22, %v441_v21  ;;  %v421_v29 = vld [vmem:[%s2427_s16 + $0xc0] sm:$0xff] }
  0x2a   : > { %825 = vperm.xlu1 %2287, %v472_v32   ;;  %820 = vperm.xlu0 %2286, %v471_v33   ;;  %v419_v27 = vld [vmem:[%s2427_s16 + $0xb0] sm:$0xff]  ;;  %v420_v28 = vld [vmem:[%s2427_s16 + $0xb8] sm:$0xff]  ;;  %v422_v30 = vld [vmem:[%s2427_s16 + $0xc8] sm:$0xff] }
  0x2b   : > { %v486_v31 = vld [vmem:[%s2406_s8 + $0xc8] sm:$0xff]  ;;  %v485_v32 = vld [vmem:[%s2406_s8 + $0xc0] sm:$0xff]  ;;  %v545_v33 = vpack.c.bf16 %v420_v28, %v419_v27  ;;  %v443_v34 = vld [vmem:[%s2462_s22 + $0x70] sm:$0xff]  ;;  %v546_v36 = vpack.c.bf16 %v422_v30, %v421_v29 }
  0x2c   : > { %v444_v35 = vld [vmem:[%s2462_s22 + $0x78] sm:$0xff]  ;;  %v445_v37 = vld [vmem:[%s2462_s22 + $0x80] sm:$0xff]  ;;  %v446_v38 = vld [vmem:[%s2462_s22 + $0x88] sm:$0xff] }
  0x2d   : > { %v1364_v41 = vpack.c.bf16 %v444_v35, %v443_v34  ;;  %v1365_v42 = vpack.c.bf16 %v446_v38, %v445_v37  ;;  %v423_v43 = vld [vmem:[%s2427_s16 + $0xd0] sm:$0xff]  ;;  %v425_v45 = vld [vmem:[%s2427_s16 + $0xe0] sm:$0xff]  ;;  %v490_v47 = vld [vmem:[%s2406_s8 + $0xe8] sm:$0xff] }
  0x2e   : > { %835 = vperm.xlu1 %2287, %v474_v39   ;;  %830 = vperm.xlu0 %2286, %v473_v40   ;;  %v488_v39 = vld [vmem:[%s2406_s8 + $0xd8] sm:$0xff]  ;;  %v487_v40 = vld [vmem:[%s2406_s8 + $0xd0] sm:$0xff]  ;;  %v489_v49 = vld [vmem:[%s2406_s8 + $0xe0] sm:$0xff] }
  0x2f   : > { %2216 = vmatmul.mubr.msk.bf16.gmra.mrb[4].mxu1 %vm551_vm2, %v1360_v9  ;;  %v447_v51 = vld [vmem:[%s2462_s22 + $0x90] sm:$0xff]  ;;  %v448_v52 = vld [vmem:[%s2462_s22 + $0x98] sm:$0xff]  ;;  %v454_v4 = vld [vmem:[%s2462_s22 + $0xc8] sm:$0xff] }
  0x30   : > { %2186 = vmatmul.mubr.msk.bf16.gmra.mrb[8].mxu0 %vm551_vm2, %v539_v44  ;;  %2219 = vmatprep.mubr.msk.bf16.mxu1 %vm551_vm2, %v1361_v10  ;;  %v424_v44 = vld [vmem:[%s2427_s16 + $0xd8] sm:$0xff]  ;;  %v491_v57 = vld [vmem:[%s2406_s8 + $0xf0] sm:$0xff]  ;;  %v1366_v58 = vpack.c.bf16 %v448_v52, %v447_v51  ;;  %v498_v10 = vld [vmem:[%s2552_s7 + $0x28] sm:$0xff] }
  0x31   : > { %2189 = vmatprep.mubr.msk.bf16.mxu0 %vm551_vm2, %v540_v46  ;;  %v426_v46 = vld [vmem:[%s2427_s16 + $0xe8] sm:$0xff]  ;;  %v547_v50 = vpack.c.bf16 %v424_v44, %v423_v43  ;;  %v492_v56 = vld [vmem:[%s2406_s8 + $0xf8] sm:$0xff]  ;;  %v427_v60 = vld [vmem:[%s2427_s16 + $0xf0] sm:$0xff] }
  0x32   : > { %845 = vperm.xlu1 %2287, %v476_v54   ;;  %840 = vperm.xlu0 %2286, %v475_v55   ;;  %v548_v53 = vpack.c.bf16 %v426_v46, %v425_v45  ;;  %v449_v54 = vld [vmem:[%s2462_s22 + $0xa0] sm:$0xff]  ;;  %v450_v55 = vld [vmem:[%s2462_s22 + $0xa8] sm:$0xff]  ;;  %v428_v61 = vld [vmem:[%s2427_s16 + $0xf8] sm:$0xff] }
  0x33   : > { %v1367_v59 = vpack.c.bf16 %v450_v55, %v449_v54  ;;  %v451_v1 = vld [vmem:[%s2462_s22 + $0xb0] sm:$0xff]  ;;  %v452_v2 = vld [vmem:[%s2462_s22 + $0xb8] sm:$0xff]  ;;  %v497_v11 = vld [vmem:[%s2552_s7 + $0x20] sm:$0xff] }
  0x34   : > { %v496_v5 = vld [vmem:[%s2552_s7 + $0x18] sm:$0xff]  ;;  %v455_v12 = vld [vmem:[%s2462_s22 + $0xd0] sm:$0xff]  ;;  %v457_v14 = vld [vmem:[%s2462_s22 + $0xe0] sm:$0xff] }
  0x35   : > { %v456_v13 = vld [vmem:[%s2462_s22 + $0xd8] sm:$0xff]  ;;  %v501_v21 = vld [vmem:[%s2552_s7 + $0x40] sm:$0xff]  ;;  %v459_v22 = vld [vmem:[%s2462_s22 + $0xf0] sm:$0xff] }
  0x36   : > { %855 = vperm.xlu1 %2287, %v478_v62   ;;  %850 = vperm.xlu0 %2286, %v477_v63   ;;  %v494_v62 = vld [vmem:[%s2552_s7 + $0x8] sm:$0xff]  ;;  %v493_v63 = vld [vmem:[%s2552_s7] sm:$0xff]  ;;  %v1370_v18 = vpack.c.bf16 %v456_v13, %v455_v12  ;;  %v508_v29 = vld [vmem:[%s2552_s7 + $0x78] sm:$0xff] }
  0x37   : > { %2220 = vmatmul.mubr.msk.bf16.gmra.mrb[8].mxu1 %vm551_vm2, %v1362_v25  ;;  %v503_v25 = vld [vmem:[%s2552_s7 + $0x50] sm:$0xff]  ;;  %v506_v27 = vld [vmem:[%s2552_s7 + $0x68] sm:$0xff]  ;;  %v505_v28 = vld [vmem:[%s2552_s7 + $0x60] sm:$0xff] }
  0x38   : > { %2190 = vmatmul.mubr.msk.bf16.gmra.mrb[12].mxu0 %vm551_vm2, %v541_v0  ;;  %2223 = vmatprep.mubr.msk.bf16.mxu1 %vm551_vm2, %v1363_v26  ;;  %v549_v0 = vpack.c.bf16 %v428_v61, %v427_v60  ;;  %v507_v30 = vld [vmem:[%s2552_s7 + $0x70] sm:$0xff]  ;;  %v514_v35 = vld [vmem:[%s2552_s7 + $0xa8] sm:$0xff]  ;;  %v516_v37 = vld [vmem:[%s2552_s7 + $0xb8] sm:$0xff] }
  0x39   : > { %2193 = vmatprep.mubr.msk.bf16.mxu0 %vm551_vm2, %v542_v3  ;;  %v453_v3 = vld [vmem:[%s2462_s22 + $0xc0] sm:$0xff]  ;;  %v511_v34 = vld [vmem:[%s2552_s7 + $0x90] sm:$0xff]  ;;  %v522_v43 = vld [vmem:[%s2552_s7 + $0xe8] sm:$0xff] }
  0x3a   : > { %865 = vperm.xlu1 %2287, %v480_v6   ;;  %860 = vperm.xlu0 %2286, %v479_v8   ;;  %v495_v6 = vld [vmem:[%s2552_s7 + $0x10] sm:$0xff]  ;;  %v1368_v8 = vpack.c.bf16 %v452_v2, %v451_v1  ;;  %v1369_v9 = vpack.c.bf16 %v454_v4, %v453_v3  ;;  %v521_v44 = vld [vmem:[%s2552_s7 + $0xe0] sm:$0xff]  ;;  %v524_v45 = vld [vmem:[%s2552_s7 + $0xf8] sm:$0xff] }
  0x3b   : > { %v515_v38 = vld [vmem:[%s2552_s7 + $0xb0] sm:$0xff] }
  0x3c   : > { %v523_v46 = vld [vmem:[%s2552_s7 + $0xf0] sm:$0xff] }
  0x3e   : > { %875 = vperm.xlu1 %2287, %v482_v15   ;;  %870 = vperm.xlu0 %2286, %v481_v16   ;;  %v458_v15 = vld [vmem:[%s2462_s22 + $0xe8] sm:$0xff]  ;;  %v500_v16 = vld [vmem:[%s2552_s7 + $0x38] sm:$0xff] }
  0x3f   : > { %2224 = vmatmul.mubr.msk.bf16.gmra.mrb[12].mxu1 %vm551_vm2, %v1364_v41  ;;  %v1371_v19 = vpack.c.bf16 %v458_v15, %v457_v14  ;;  %v520_v41 = vld [vmem:[%s2552_s7 + $0xd8] sm:$0xff] }
  0x40   : > { %2194 = vmatmul.mubr.msk.bf16.gmra.mrb[16].mxu0 %vm551_vm2, %v543_v17  ;;  %2227 = vmatprep.mubr.msk.bf16.mxu1 %vm551_vm2, %v1365_v42  ;;  %v499_v17 = vld [vmem:[%s2552_s7 + $0x30] sm:$0xff] }
  0x41   : > { %2197 = vmatprep.mubr.msk.bf16.mxu0 %vm551_vm2, %v544_v20  ;;  %v502_v20 = vld [vmem:[%s2552_s7 + $0x48] sm:$0xff]  ;;  %v519_v42 = vld [vmem:[%s2552_s7 + $0xd0] sm:$0xff] }
  0x42   : > { %885 = vperm.xlu1 %2287, %v484_v23   ;;  %880 = vperm.xlu0 %2286, %v483_v24   ;;  %v460_v23 = vld [vmem:[%s2462_s22 + $0xf8] sm:$0xff] }
  0x43   : > { %v504_v24 = vld [vmem:[%s2552_s7 + $0x58] sm:$0xff]  ;;  %v1372_v26 = vpack.c.bf16 %v460_v23, %v459_v22 }
  0x46   : > { %895 = vperm.xlu1 %2287, %v486_v31   ;;  %890 = vperm.xlu0 %2286, %v485_v32   ;;  %v510_v31 = vld [vmem:[%s2552_s7 + $0x88] sm:$0xff]  ;;  %v509_v32 = vld [vmem:[%s2552_s7 + $0x80] sm:$0xff] }
  0x47   : > { %2228 = vmatmul.mubr.msk.bf16.gmra.mrb[16].mxu1 %vm551_vm2, %v1366_v58 }
  0x48   : > { %2198 = vmatmul.mubr.msk.bf16.gmra.mrb[20].mxu0 %vm551_vm2, %v545_v33  ;;  %2231 = vmatprep.mubr.msk.bf16.mxu1 %vm551_vm2, %v1367_v59  ;;  %v512_v33 = vld [vmem:[%s2552_s7 + $0x98] sm:$0xff] }
  0x49   : > { %2201 = vmatprep.mubr.msk.bf16.mxu0 %vm551_vm2, %v546_v36  ;;  %v513_v36 = vld [vmem:[%s2552_s7 + $0xa0] sm:$0xff] }
  0x4a   : > { %905 = vperm.xlu1 %2287, %v488_v39   ;;  %900 = vperm.xlu0 %2286, %v487_v40   ;;  %v518_v39 = vld [vmem:[%s2552_s7 + $0xc8] sm:$0xff]  ;;  %v517_v40 = vld [vmem:[%s2552_s7 + $0xc0] sm:$0xff] }
  0x4e   : > { %915 = vperm.xlu1 %2287, %v490_v47   ;;  %910 = vperm.xlu0 %2286, %v489_v49  }
  0x4f   : > { %2232 = vmatmul.mubr.msk.bf16.gmra.mrb[20].mxu1 %vm551_vm2, %v1368_v8 }
  0x50   : > { %2202 = vmatmul.mubr.msk.bf16.gmra.mrb[24].mxu0 %vm551_vm2, %v547_v50  ;;  %2235 = vmatprep.mubr.msk.bf16.mxu1 %vm551_vm2, %v1369_v9  ;;  %v525_v50 = vmul.f32 %v2421_v7, %v2421_v7 }
  0x51   : > { %2205 = vmatprep.mubr.msk.bf16.mxu0 %vm551_vm2, %v548_v53 }
  0x52   : > { %925 = vperm.xlu1 %2287, %v492_v56   ;;  %920 = vperm.xlu0 %2286, %v491_v57   ;;  %v527_v53 = vsel %vm526_vm3, %v525_v50, 0.0 }
  0x53   : > { %v528_v54 = vrot.slane %v527_v53, 4 }
  0x55   : > { %v529_v57 = vadd.f32 %v528_v54, %v527_v53 }
  0x56   : > { %1662 = vperm.xlu1 %2287, %v494_v62   ;;  %1657 = vperm.xlu0 %2286, %v493_v63  }
  0x57   : > { %2236 = vmatmul.mubr.msk.bf16.gmra.mrb[24].mxu1 %vm551_vm2, %v1370_v18  ;;  %v530_v60 = vrot.slane %v529_v57, 2 }
  0x58   : > { %2206 = vmatmul.mubr.msk.bf16.gmra.mrb[28].mxu0 %vm551_vm2, %v549_v0  ;;  %2239 = vmatprep.mubr.msk.bf16.mxu1 %vm551_vm2, %v1371_v19 }
  0x59   : > { %v531_v61 = vadd.f32 %v530_v60, %v529_v57 }
  0x5a   : > { %1672 = vperm.xlu1 %2287, %v496_v5   ;;  %1667 = vperm.xlu0 %2286, %v495_v6  }
  0x5b   : > { %v532_v0 = vrot.slane %v531_v61, 1 }
  0x5d   : > { %v2614_v7 = vadd.f32 %v532_v0, %v531_v61 }
  0x5e   : > { %1682 = vperm.xlu1 %2287, %v498_v10   ;;  %1677 = vperm.xlu0 %2286, %v497_v11  }
  0x5f   : > { %2240 = vmatmul.mubr.msk.bf16.gmra.mrb[28].mxu1 %vm551_vm2, %v1372_v26 }
  0x62   : > { %1692 = vperm.xlu1 %2287, %v500_v16   ;;  %1687 = vperm.xlu0 %2286, %v499_v17  }
  0x66   : > { %1702 = vperm.xlu1 %2287, %v502_v20   ;;  %1697 = vperm.xlu0 %2286, %v501_v21  }
  0x6a   : > { %1712 = vperm.xlu1 %2287, %v504_v24   ;;  %1707 = vperm.xlu0 %2286, %v503_v25  }
  0x6e   : > { %1722 = vperm.xlu1 %2287, %v506_v27   ;;  %1717 = vperm.xlu0 %2286, %v505_v28  }
  0x72   : > { %1732 = vperm.xlu1 %2287, %v508_v29   ;;  %1727 = vperm.xlu0 %2286, %v507_v30  }
  0x76   : > { %1742 = vperm.xlu1 %2287, %v510_v31   ;;  %1737 = vperm.xlu0 %2286, %v509_v32  }
  0x7a   : > { %1752 = vperm.xlu1 %2287, %v512_v33   ;;  %1747 = vperm.xlu0 %2286, %v511_v34  }
  0x7e   : > { %1762 = vperm.xlu1 %2287, %v514_v35   ;;  %1757 = vperm.xlu0 %2286, %v513_v36  }
  0x82   : > { %1772 = vperm.xlu1 %2287, %v516_v37   ;;  %1767 = vperm.xlu0 %2286, %v515_v38  }
  0x86   : > { %1782 = vperm.xlu1 %2287, %v518_v39   ;;  %1777 = vperm.xlu0 %2286, %v517_v40  }
  0x8a   : > { %1792 = vperm.xlu1 %2287, %v520_v41   ;;  %1787 = vperm.xlu0 %2286, %v519_v42  }
  0x8e   : > { %1802 = vperm.xlu1 %2287, %v522_v43   ;;  %1797 = vperm.xlu0 %2286, %v521_v44  }
  0x92   : > { %1812 = vperm.xlu1 %2287, %v524_v45   ;;  %1807 = vperm.xlu0 %2286, %v523_v46  }
  0x95   : > { %v781_v47 = vpop.permute.xlu1 %780  ;;  %v771_v49 = vpop.permute.xlu0 %770 }
  0x96   : > { %v930_v3 = vadd.f32 %v781_v47, %v2614_v7  ;;  %v928_v10 = vadd.f32 %v771_v49, %v2614_v7 }
  0x99   : > { %v786_v51 = vpop.permute.xlu1 %785  ;;  %v776_v52 = vpop.permute.xlu0 %775 }
  0x9a   : > { %v931_v14 = vadd.f32 %v786_v51, %v2614_v7  ;;  %v929_v18 = vadd.f32 %v776_v52, %v2614_v7 }
  0x9d   : > { %v796_v55 = vpop.permute.xlu1 %795  ;;  %v791_v56 = vpop.permute.xlu0 %790 }
  0x9e   : > { %v932_v28 = vadd.f32 %v791_v56, %v2614_v7  ;;  %v933_v38 = vadd.f32 %v796_v55, %v2614_v7 }
  0xa1   : > { %v806_v58 = vpop.permute.xlu1 %805  ;;  %v801_v59 = vpop.permute.xlu0 %800 }
  0xa2   : > { %v934_v25 = vadd.f32 %v801_v59, %v2614_v7  ;;  %v935_v33 = vadd.f32 %v806_v58, %v2614_v7 }
  0xa5   : > { %v2610_v62 = vpop.permute.xlu1 %815  ;;  %v811_v63 = vpop.permute.xlu0 %810 }
  0xa6   : > { %v936_v57 = vadd.f32 %v811_v63, %v2614_v7 }
  0xa9   : > { %v2612_v1 = vpop.permute.xlu1 %825  ;;  %v821_v2 = vpop.permute.xlu0 %820 }
  0xaa   : > { %v938_v52 = vadd.f32 %v821_v2, %v2614_v7 }
  0xad   : > { %v2617_v4 = vpop.permute.xlu1 %835  ;;  %v2619_v5 = vpop.permute.xlu0 %830 }
  0xb1   : > { %v2624_v19 = vpop.permute.xlu1 %845  ;;  %v841_v21 = vpop.permute.xlu0 %840 }
  0xb5   : > { %v2628_v30 = vpop.permute.xlu1 %855  ;;  %v2631_v34 = vpop.permute.xlu0 %850 }
  0xb9   : > { %v2656_v58 = vpop.permute.xlu1 %865  ;;  %v861_v59 = vpop.permute.xlu0 %860 }
  0xf3   : > { %v2179_v6 = vpop.f32.mrb[0].mxu0 }
  0xf4   : > { %v962_v8 = vmul.f32 2.0, %v2179_v6  ;;  %v641_v9 = vpop.f32.mrb[1].mxu0 }
  0xf5   : > { %v960_v11 = vmul.f32 2.0, %v641_v9  ;;  %v2180_v13 = vpop.f32.mrb[2].mxu0 }
  0xf6   : > { %v994_v12 = vsub.f32 %v930_v3, %v962_v8  ;;  %v963_v16 = vmul.f32 2.0, %v2180_v13  ;;  %v644_v17 = vpop.f32.mrb[3].mxu0  ;;  %v939_v8 = vadd.f32 %v2612_v1, %v2614_v7 }
  0xf7   : > { %v992_v15 = vsub.f32 %v928_v10, %v960_v11  ;;  %v961_v20 = vmul.f32 2.0, %v644_v17 }
  0xf8   : > { %v995_v22 = vsub.f32 %v931_v14, %v963_v16  ;;  %v2634_v39 = vmax.f32 %v994_v12, 0.0  ;;  %v937_v12 = vadd.f32 %v2610_v62, %v2614_v7 }
  0xf9   : > { %v993_v23 = vsub.f32 %v929_v18, %v961_v20  ;;  %v2638_v42 = vmax.f32 %v992_v15, 0.0 }
  0xfa   : > { %v2644_v47 = vmax.f32 %v995_v22, 0.0  ;;  %v2662_v6 = vpop.f32.mrb[0].mxu1 }
  0xfb   : > { %v2183_v24 = vpop.f32.mrb[4].mxu0  ;;  %v2651_v53 = vmax.f32 %v993_v23, 0.0  ;;  %3389 = vst [vmem:[#allocation3_spill] sm:$0xff] %v2662_v6  ;;  %v2666_v11 = vpop.f32.mrb[1].mxu1 }
  0xfc   : > { %v966_v26 = vmul.f32 2.0, %v2183_v24  ;;  %v657_v27 = vpop.f32.mrb[5].mxu0  ;;  %3390 = vst [vmem:[#allocation4_spill] sm:$0xff] %v2666_v11  ;;  %v2672_v15 = vpop.f32.mrb[2].mxu1  ;;  %v942_v24 = vadd.f32 %v841_v21, %v2614_v7  ;;  %v943_v21 = vadd.f32 %v2624_v19, %v2614_v7 }
  0xfd   : > { %v964_v29 = vmul.f32 2.0, %v657_v27  ;;  %v2184_v32 = vpop.f32.mrb[6].mxu0  ;;  %3391 = vst [vmem:[#allocation5_spill] sm:$0xff] %v2672_v15  ;;  %v2679_v20 = vpop.f32.mrb[3].mxu1 }
  0xfe   : > { %v998_v31 = vsub.f32 %v934_v25, %v966_v26  ;;  %v967_v36 = vmul.f32 2.0, %v2184_v32  ;;  %v660_v37 = vpop.f32.mrb[7].mxu0  ;;  %3392 = vst [vmem:[#allocation6_spill] sm:$0xff] %v2679_v20 }
  0xff   : > { %v996_v35 = vsub.f32 %v932_v28, %v964_v29  ;;  %v965_v41 = vmul.f32 2.0, %v660_v37  ;;  %v940_v28 = vadd.f32 %v2619_v5, %v2614_v7  ;;  %v2691_v29 = vpop.permute.xlu1 %875  ;;  %v941_v5 = vadd.f32 %v2617_v4, %v2614_v7 }
 0x100   : > { %v2636_v40 = vmax.f32 %v998_v31, 0.0  ;;  %v999_v44 = vsub.f32 %v935_v33, %v967_v36  ;;  %v871_v31 = vpop.permute.xlu0 %870 }
 0x101   : > { %v2640_v43 = vmax.f32 %v996_v35, 0.0  ;;  %v997_v46 = vsub.f32 %v933_v38, %v965_v41 }
 0x102   : > { %v1058_v45 = vmin.f32 %v2634_v39, %v2636_v40  ;;  %v2648_v50 = vmax.f32 %v999_v44, 0.0  ;;  %v2695_v38 = vpop.f32.mrb[4].mxu1 }
 0x103   : > { %v1056_v49 = vmin.f32 %v2638_v42, %v2640_v43  ;;  %v2187_v51 = vpop.f32.mrb[8].mxu0  ;;  %v2653_v54 = vmax.f32 %v997_v46, 0.0  ;;  %3393 = vst [vmem:[#allocation7_spill] sm:$0xff] %v2695_v38  ;;  %v2699_v46 = vpop.f32.mrb[5].mxu1 }
 0x104   : > { %v970_v55 = vmul.f32 2.0, %v2187_v51  ;;  %v673_v56 = vpop.f32.mrb[9].mxu0  ;;  %v1059_v60 = vmin.f32 %v2644_v47, %v2648_v50  ;;  %3394 = vst [vmem:[#allocation8_spill] sm:$0xff] %v2699_v46 }
 0x105   : > { %v968_v61 = vmul.f32 2.0, %v673_v56  ;;  %v1057_v0 = vmin.f32 %v2651_v53, %v2653_v54  ;;  %v2188_v2 = vpop.f32.mrb[10].mxu0 }
 0x106   : > { %v1002_v3 = vsub.f32 %v938_v52, %v970_v55  ;;  %v971_v10 = vmul.f32 2.0, %v2188_v2  ;;  %v676_v63 = vpop.f32.mrb[11].mxu0  ;;  %v2705_v52 = vpop.f32.mrb[6].mxu1  ;;  %v946_v2 = vadd.f32 %v861_v59, %v2614_v7 }
 0x107   : > { %v1000_v9 = vsub.f32 %v936_v57, %v968_v61  ;;  %v969_v14 = vmul.f32 2.0, %v676_v63  ;;  %3395 = vst [vmem:[#allocation9_spill] sm:$0xff] %v2705_v52  ;;  %v881_v61 = vpop.permute.xlu0 %880  ;;  %v944_v63 = vadd.f32 %v2631_v34, %v2614_v7 }
 0x108   : > { %v2670_v13 = vmax.f32 %v1002_v3, 0.0  ;;  %v1003_v17 = vsub.f32 %v939_v8, %v971_v10 }
 0x109   : > { %v2674_v16 = vmax.f32 %v1000_v9, 0.0  ;;  %v1001_v1 = vsub.f32 %v937_v12, %v969_v14  ;;  %v886_v12 = vpop.permute.xlu1 %885 }
 0x10a   : > { %v2677_v18 = vmin.f32 %v1058_v45, %v2670_v13  ;;  %v2684_v23 = vmax.f32 %v1003_v17, 0.0 }
 0x10b   : > { %v2682_v22 = vmin.f32 %v1056_v49, %v2674_v16  ;;  %v2191_v62 = vpop.f32.mrb[12].mxu0  ;;  %v2687_v25 = vmax.f32 %v1001_v1, 0.0  ;;  %v947_v1 = vadd.f32 %v2656_v58, %v2614_v7  ;;  %v891_v58 = vpop.permute.xlu0 %890 }
 0x10c   : > { %v974_v26 = vmul.f32 2.0, %v2191_v62  ;;  %v689_v27 = vpop.f32.mrb[13].mxu0  ;;  %v1063_v32 = vmin.f32 %v1059_v60, %v2684_v23  ;;  %v2711_v60 = vpop.f32.mrb[7].mxu1 }
 0x10d   : > { %v972_v33 = vmul.f32 2.0, %v689_v27  ;;  %v1061_v35 = vmin.f32 %v1057_v0, %v2687_v25  ;;  %v2192_v37 = vpop.f32.mrb[14].mxu0  ;;  %3396 = vst [vmem:[#allocation10_spill] sm:$0xff] %v2711_v60  ;;  %v945_v27 = vadd.f32 %v2628_v30, %v2614_v7  ;;  %v896_v30 = vpop.permute.xlu1 %895 }
 0x10e   : > { %v1006_v36 = vsub.f32 %v942_v24, %v974_v26  ;;  %v975_v44 = vmul.f32 2.0, %v2192_v37  ;;  %v692_v45 = vpop.f32.mrb[15].mxu0  ;;  %v2726_v26 = vpop.f32.mrb[8].mxu1 }
 0x10f   : > { %v1004_v41 = vsub.f32 %v940_v28, %v972_v33  ;;  %v973_v51 = vmul.f32 2.0, %v692_v45  ;;  %3397 = vst [vmem:[#allocation11_spill] sm:$0xff] %v2726_v26  ;;  %v2730_v33 = vpop.f32.mrb[9].mxu1 }
 0x110   : > { %v2703_v49 = vmax.f32 %v1006_v36, 0.0  ;;  %v1007_v56 = vsub.f32 %v943_v21, %v975_v44  ;;  %3398 = vst [vmem:[#allocation12_spill] sm:$0xff] %v2730_v33  ;;  %v2734_v37 = vpop.f32.mrb[10].mxu1 }
 0x111   : > { %v2707_v55 = vmax.f32 %v1004_v41, 0.0  ;;  %v1005_v19 = vsub.f32 %v941_v5, %v973_v51  ;;  %3399 = vst [vmem:[#allocation13_spill] sm:$0xff] %v2734_v37  ;;  %v2738_v41 = vpop.f32.mrb[11].mxu1 }
 0x112   : > { %v1066_v57 = vmin.f32 %v2677_v18, %v2703_v49  ;;  %v2715_v3 = vmax.f32 %v1007_v56, 0.0  ;;  %3400 = vst [vmem:[#allocation14_spill] sm:$0xff] %v2738_v41 }
 0x113   : > { %v1064_v0 = vmin.f32 %v2682_v22, %v2707_v55  ;;  %v2195_v4 = vpop.f32.mrb[16].mxu0  ;;  %v2718_v8 = vmax.f32 %v1005_v19, 0.0  ;;  %v950_v19 = vadd.f32 %v881_v61, %v2614_v7  ;;  %v949_v61 = vadd.f32 %v2691_v29, %v2614_v7 }
 0x114   : > { %v978_v9 = vmul.f32 2.0, %v2195_v4  ;;  %v705_v10 = vpop.f32.mrb[17].mxu0  ;;  %v1067_v14 = vmin.f32 %v1063_v32, %v2715_v3 }
 0x115   : > { %v976_v17 = vmul.f32 2.0, %v705_v10  ;;  %v2196_v18 = vpop.f32.mrb[18].mxu0  ;;  %v1065_v22 = vmin.f32 %v1061_v35, %v2718_v8  ;;  %v948_v10 = vadd.f32 %v871_v31, %v2614_v7 }
 0x116   : > { %v1010_v62 = vsub.f32 %v946_v2, %v978_v9  ;;  %v979_v24 = vmul.f32 2.0, %v2196_v18  ;;  %v708_v59 = vpop.f32.mrb[19].mxu0  ;;  %v951_v18 = vadd.f32 %v886_v12, %v2614_v7 }
 0x117   : > { %v1008_v28 = vsub.f32 %v944_v63, %v976_v17  ;;  %v977_v34 = vmul.f32 2.0, %v708_v59 }
 0x118   : > { %v2732_v32 = vmax.f32 %v1010_v62, 0.0  ;;  %v1011_v36 = vsub.f32 %v947_v1, %v979_v24  ;;  %v2753_v24 = vpop.f32.mrb[12].mxu1 }
 0x119   : > { %v2736_v21 = vmax.f32 %v1008_v28, 0.0  ;;  %v1009_v35 = vsub.f32 %v945_v27, %v977_v34  ;;  %3401 = vst [vmem:[#allocation15_spill] sm:$0xff] %v2753_v24  ;;  %v2757_v28 = vpop.f32.mrb[13].mxu1 }
 0x11a   : > { %v1070_v44 = vmin.f32 %v1066_v57, %v2732_v32  ;;  %v2741_v45 = vmax.f32 %v1011_v36, 0.0  ;;  %3402 = vst [vmem:[#allocation16_spill] sm:$0xff] %v2757_v28  ;;  %v2761_v34 = vpop.f32.mrb[14].mxu1  ;;  %v906_v36 = vpop.permute.xlu1 %905 }
 0x11b   : > { %v1068_v5 = vmin.f32 %v1064_v0, %v2736_v21  ;;  %v2744_v51 = vmax.f32 %v1009_v35, 0.0  ;;  %v2199_v56 = vpop.f32.mrb[20].mxu0  ;;  %3403 = vst [vmem:[#allocation17_spill] sm:$0xff] %v2761_v34 }
 0x11c   : > { %v1071_v4 = vmin.f32 %v1067_v14, %v2741_v45  ;;  %v982_v2 = vmul.f32 2.0, %v2199_v56  ;;  %v721_v9 = vpop.f32.mrb[21].mxu0  ;;  %v901_v14 = vpop.permute.xlu0 %900 }
 0x11d   : > { %v2750_v63 = vmin.f32 %v1065_v22, %v2744_v51  ;;  %v980_v57 = vmul.f32 2.0, %v721_v9  ;;  %v2200_v17 = vpop.f32.mrb[22].mxu0  ;;  %v2765_v56 = vpop.f32.mrb[15].mxu1 }
 0x11e   : > { %v1014_v1 = vsub.f32 %v950_v19, %v982_v2  ;;  %v983_v0 = vmul.f32 2.0, %v2200_v17  ;;  %v724_v62 = vpop.f32.mrb[23].mxu0  ;;  %3404 = vst [vmem:[#allocation18_spill] sm:$0xff] %v2765_v56  ;;  %v2779_v48 = vpop.f32.mrb[16].mxu1 }
 0x11f   : > { %v1012_v59 = vsub.f32 %v948_v10, %v980_v57  ;;  %v981_v27 = vmul.f32 2.0, %v724_v62  ;;  %v954_v57 = vadd.f32 %v901_v14, %v2614_v7  ;;  %3405 = vst [vmem:[#allocation19_spill] sm:$0xff] %v2779_v48  ;;  %v953_v14 = vadd.f32 %v896_v30, %v2614_v7  ;;  %v2782_v34 = vpop.f32.mrb[17].mxu1 }
 0x120   : > { %v2759_v31 = vmax.f32 %v1014_v1, 0.0  ;;  %v1015_v22 = vsub.f32 %v951_v18, %v983_v0  ;;  %v952_v0 = vadd.f32 %v891_v58, %v2614_v7  ;;  %v911_v62 = vpop.permute.xlu0 %910  ;;  %3406 = vst [vmem:[#allocation20_spill] sm:$0xff] %v2782_v34 }
 0x121   : > { %v2763_v12 = vmax.f32 %v1012_v59, 0.0  ;;  %v1013_v35 = vsub.f32 %v949_v61, %v981_v27  ;;  %v955_v27 = vadd.f32 %v906_v36, %v2614_v7 }
 0x122   : > { %v1074_v19 = vmin.f32 %v1070_v44, %v2759_v31  ;;  %v2768_v2 = vmax.f32 %v1015_v22, 0.0 }
 0x123   : > { %v1072_v29 = vmin.f32 %v1068_v5, %v2763_v12  ;;  %v2771_v9 = vmax.f32 %v1013_v35, 0.0  ;;  %v2203_v10 = vpop.f32.mrb[24].mxu0 }
 0x124   : > { %v1075_v17 = vmin.f32 %v1071_v4, %v2768_v2  ;;  %v986_v18 = vmul.f32 2.0, %v2203_v10  ;;  %v737_v1 = vpop.f32.mrb[25].mxu0  ;;  %v916_v4 = vpop.permute.xlu1 %915 }
 0x125   : > { %v1073_v61 = vmin.f32 %v2750_v63, %v2771_v9  ;;  %v984_v44 = vmul.f32 2.0, %v737_v1  ;;  %v2204_v59 = vpop.f32.mrb[26].mxu0  ;;  %v2786_v63 = vpop.f32.mrb[18].mxu1 }
 0x126   : > { %v1018_v5 = vsub.f32 %v954_v57, %v986_v18  ;;  %v987_v22 = vmul.f32 2.0, %v2204_v59  ;;  %v740_v35 = vpop.f32.mrb[27].mxu0  ;;  %3407 = vst [vmem:[#allocation21_spill] sm:$0xff] %v2786_v63  ;;  %v2790_v57 = vpop.f32.mrb[19].mxu1 }
 0x127   : > { %v1016_v10 = vsub.f32 %v952_v0, %v984_v44  ;;  %v985_v56 = vmul.f32 2.0, %v740_v35  ;;  %3408 = vst [vmem:[#allocation22_spill] sm:$0xff] %v2790_v57  ;;  %v921_v30 = vpop.permute.xlu0 %920  ;;  %v2803_v48 = vpop.f32.mrb[20].mxu1 }
 0x128   : > { %v2784_v58 = vmax.f32 %v1018_v5, 0.0  ;;  %v1019_v28 = vsub.f32 %v955_v27, %v987_v22  ;;  %v958_v5 = vadd.f32 %v921_v30, %v2614_v7  ;;  %3409 = vst [vmem:[#allocation23_spill] sm:$0xff] %v2803_v48  ;;  %v957_v30 = vadd.f32 %v916_v4, %v2614_v7 }
 0x129   : > { %v2788_v1 = vmax.f32 %v1016_v10, 0.0  ;;  %v1017_v36 = vsub.f32 %v953_v14, %v985_v56  ;;  %v956_v56 = vadd.f32 %v911_v62, %v2614_v7  ;;  %v926_v14 = vpop.permute.xlu1 %925 }
 0x12a   : > { %v1078_v18 = vmin.f32 %v1074_v19, %v2784_v58  ;;  %v2793_v59 = vmax.f32 %v1019_v28, 0.0  ;;  %v959_v63 = vadd.f32 %v926_v14, %v2614_v7 }
 0x12b   : > { %v1076_v0 = vmin.f32 %v1072_v29, %v2788_v1  ;;  %v2796_v44 = vmax.f32 %v1017_v36, 0.0  ;;  %v2207_v35 = vpop.f32.mrb[28].mxu0 }
 0x12c   : > { %v1079_v27 = vmin.f32 %v1075_v17, %v2793_v59  ;;  %v990_v22 = vmul.f32 2.0, %v2207_v35  ;;  %v753_v10 = vpop.f32.mrb[29].mxu0  ;;  %v2806_v35 = vpop.f32.mrb[21].mxu1 }
 0x12d   : > { %v1077_v57 = vmin.f32 %v1073_v61, %v2796_v44  ;;  %v988_v19 = vmul.f32 2.0, %v753_v10  ;;  %v2208_v28 = vpop.f32.mrb[30].mxu0  ;;  %3410 = vst [vmem:[#allocation24_spill] sm:$0xff] %v2806_v35  ;;  %v2810_v37 = vpop.f32.mrb[22].mxu1 }
 0x12e   : > { %v1022_v34 = vsub.f32 %v958_v5, %v990_v22  ;;  %v991_v29 = vmul.f32 2.0, %v2208_v28  ;;  %v756_v36 = vpop.f32.mrb[31].mxu0  ;;  %3411 = vst [vmem:[#allocation25_spill] sm:$0xff] %v2810_v37  ;;  %v2814_v14 = vpop.f32.mrb[23].mxu1 }
 0x12f   : > { %v1020_v24 = vsub.f32 %v956_v56, %v988_v19  ;;  %v989_v17 = vmul.f32 2.0, %v756_v36  ;;  %3412 = vst [vmem:[#allocation26_spill] sm:$0xff] %v2814_v14  ;;  %v1093_v19 = vlaneseq  ;;  %v2824_v28 = vpop.f32.mrb[24].mxu1 }
 0x130   : > { %v2808_v41 = vmax.f32 %v1022_v34, 0.0  ;;  %v1023_v62 = vsub.f32 %v959_v63, %v991_v29  ;;  %3414 = vst [vmem:[#allocation28_spill] sm:$0xff] %v2824_v28  ;;  %v2826_v29 = vpop.f32.mrb[25].mxu1 }
 0x131   : > { %v2812_v61 = vmax.f32 %v1020_v24, 0.0  ;;  %v1021_v10 = vsub.f32 %v957_v30, %v989_v17  ;;  %3415 = vst [vmem:[#allocation29_spill] sm:$0xff] %v2826_v29  ;;  %v2828_v36 = vpop.f32.mrb[26].mxu1  ;;  %v2832_v17 = vshrl.u32 %v1093_v19, 7 }
 0x132   : > { %v1082_v5 = vmin.f32 %v1078_v18, %v2808_v41  ;;  %v2817_v22 = vmax.f32 %v1023_v62, 0.0  ;;  %3416 = vst [vmem:[#allocation30_spill] sm:$0xff] %v2828_v36  ;;  %v2830_v30 = vpop.f32.mrb[27].mxu1 }
 0x133   : > { %v1080_v7 = vmin.f32 %v1076_v0, %v2812_v61  ;;  %v2820_v4 = vmax.f32 %v1021_v10, 0.0  ;;  %3417 = vst [vmem:[#allocation31_spill] sm:$0xff] %v2830_v30  ;;  %v2841_v10 = vadd.s32 24, %v2832_v17  ;;  %v2871_v29 = vadd.s32 88, %v2832_v17 }
 0x134   : > { %3413 = vst [vmem:[#allocation27_spill] sm:$0xff] %v2817_v22  ;;  %v1083_v56 = vmin.f32 %v1079_v27, %v2817_v22  ;;  %v2835_v27 = vadd.s32 8, %v2832_v17  ;;  %v2877_v28 = vadd.s32 104, %v2832_v17  ;;  %v2882_v37 = vadd.s32 112, %v2832_v17 }
 0x135   : > { %v1081_v34 = vmin.f32 %v1077_v57, %v2820_v4  ;;  %v2838_v57 = vadd.s32 16, %v2832_v17  ;;  %v2885_v35 = vadd.s32 120, %v2832_v17  ;;  %v2894_v48 = vadd.s32 144, %v2832_v17 }
 0x136   : > { %v1085_v63 = vmin.f32 %v1082_v5, %v1083_v56  ;;  %v2843_v5 = vpop.f32.mrb[28].mxu1  ;;  %v2846_v56 = vadd.s32 32, %v2832_v17  ;;  %v2897_v33 = vadd.s32 152, %v2832_v17  ;;  %v2903_v26 = vadd.s32 168, %v2832_v17 }
 0x137   : > { %v1084_v24 = vmin.f32 %v1080_v7, %v1081_v34  ;;  %3418 = vst [vmem:[#allocation32_spill] sm:$0xff] %v2843_v5  ;;  %v2849_v34 = vadd.s32 40, %v2832_v17  ;;  %v2854_v19 = vpop.f32.mrb[29].mxu1  ;;  %v2866_v5 = vadd.s32 80, %v2832_v17  ;;  %v2906_v60 = vadd.s32 176, %v2832_v17 }
 0x138   : > { %3419 = vst [vmem:[#allocation33_spill] sm:$0xff] %v2854_v19  ;;  %v2868_v30 = vpop.f32.mrb[30].mxu1  ;;  %v2874_v19 = vadd.s32 96, %v2832_v17  ;;  %3424 = vst [vmem:[#allocation38_spill] sm:$0xff] %v2903_v26  ;;  %v2909_v52 = vadd.s32 184, %v2832_v17  ;;  %v2912_v46 = vadd.s32 192, %v2832_v17 }
 0x139   : > { %v1086_v18 = vmin.f32 %v1084_v24, %v1085_v63  ;;  %v2852_v63 = vadd.s32 48, %v2832_v17  ;;  %v2857_v24 = vadd.s32 56, %v2832_v17  ;;  %3420 = vst [vmem:[#allocation34_spill] sm:$0xff] %v2868_v30  ;;  %v2879_v14 = vpop.f32.mrb[31].mxu1  ;;  %v2888_v30 = vadd.s32 128, %v2832_v17  ;;  %3425 = vst [vmem:[#allocation39_spill] sm:$0xff] %v2906_v60 }
 0x13a   : > { %3421 = vst [vmem:[#allocation35_spill] sm:$0xff] %v2879_v14  ;;  %v2900_v14 = vadd.s32 160, %v2832_v17  ;;  %3426 = vst [vmem:[#allocation40_spill] sm:$0xff] %v2909_v52  ;;  %v2917_v20 = vadd.s32 200, %v2832_v17  ;;  %v2920_v15 = vadd.s32 208, %v2832_v17  ;;  %v2923_v11 = vadd.s32 216, %v2832_v17 }
 0x13b   : > { %v1087_v0 = vrot.slane %v1086_v18, 4  ;;  %3422 = vst [vmem:[#allocation36_spill] sm:$0xff] %v2888_v30  ;;  %3427 = vst [vmem:[#allocation41_spill] sm:$0xff] %v2912_v46  ;;  %v2926_v6 = vadd.s32 224, %v2832_v17  ;;  %v2929_v60 = vadd.s32 232, %v2832_v17  ;;  %v2932_v52 = vadd.s32 240, %v2832_v17 }
 0x13c   : > { %3429 = vst [vmem:[#allocation43_spill] sm:$0xff] %v2917_v20  ;;  %3430 = vst [vmem:[#allocation44_spill] sm:$0xff] %v2920_v15 }
 0x13d   : > { %v1088_v62 = vmin.f32 %v1086_v18, %v1087_v0  ;;  %v2860_v18 = vadd.s32 64, %v2832_v17  ;;  %v2863_v0 = vadd.s32 72, %v2832_v17  ;;  %3431 = vst [vmem:[#allocation45_spill] sm:$0xff] %v2923_v11  ;;  %3432 = vst [vmem:[#allocation46_spill] sm:$0xff] %v2926_v6 }
 0x13e   : > { %3433 = vst [vmem:[#allocation47_spill] sm:$0xff] %v2929_v60  ;;  %3434 = vst [vmem:[#allocation48_spill] sm:$0xff] %v2932_v52 }
 0x13f   : > { %v1089_v7 = vrot.slane %v1088_v62, 2 }
 0x141   : > { %v1090_v36 = vmin.f32 %v1088_v62, %v1089_v7  ;;  %v2891_v62 = vadd.s32 136, %v2832_v17 }
 0x143   : > { %3423 = vst [vmem:[#allocation37_spill] sm:$0xff] %v2891_v62  ;;  %v1091_v7 = vrot.slane %v1090_v36, 1 }
 0x145   : > { %v2914_v38 = vmin.f32 %v1090_v36, %v1091_v7  ;;  %v2935_v36 = vadd.s32 248, %v2832_v17 }
 0x147   : > { %3428 = vst [vmem:[#allocation42_spill] sm:$0xff] %v2914_v38  ;;  %3435 = vst [vmem:[#allocation49_spill] sm:$0xff] %v2935_v36  ;;  %vm1126_vm4 = vcmp.le.f32.partialorder %v2638_v42, %v2914_v38  ;;  %vm1127_vm5 = vcmp.le.f32.partialorder %v2651_v53, %v2914_v38  ;;  %vm1128_vm6 = vcmp.le.f32.partialorder %v2634_v39, %v2914_v38 }
 0x148   : > { %vm1129_vm7 = vcmp.le.f32.partialorder %v2644_v47, %v2914_v38  ;;  %vm1130_vm8 = vcmp.le.f32.partialorder %v2640_v43, %v2914_v38  ;;  %vm1131_vm9 = vcmp.le.f32.partialorder %v2653_v54, %v2914_v38  ;;  %vm1132_vm10 = vcmp.le.f32.partialorder %v2636_v40, %v2914_v38 }
 0x149   : > { %vm1133_vm11 = vcmp.le.f32.partialorder %v2648_v50, %v2914_v38  ;;  %vm1134_vm12 = vcmp.le.f32.partialorder %v2674_v16, %v2914_v38  ;;  %vm1151_vm15 = vcmp.le.f32.partialorder %v2796_v44, %v2914_v38  ;;  %vm1152_vm1 = vcmp.le.f32.partialorder %v2784_v58, %v2914_v38 }
 0x14a   : > { %vm1153_vm2 = vcmp.le.f32.partialorder %v2793_v59, %v2914_v38  ;;  %vm1154_vm3 = vcmp.le.f32.partialorder %v2812_v61, %v2914_v38  ;;  %vm1155_vm0 = vcmp.le.f32.partialorder %v2820_v4, %v2914_v38  ;;  %vm1156_vm13 = vcmp.le.f32.partialorder %v2808_v41, %v2914_v38 }
 0x14b   : > { %vm1157_vm14 = vcmp.le.f32.partialorder %v2817_v22, %v2914_v38  ;;  %v1158_v7 = vsel %vm1126_vm4, %v2832_v17, 256  ;;  %v1159_v36 = vsel %vm1127_vm5, %v2835_v27, 256  ;;  %v1160_v52 = vsel %vm1128_vm6, %v2838_v57, 256 }
 0x14c   : > { %v1161_v22 = vsel %vm1129_vm7, %v2841_v10, 256  ;;  %v1162_v42 = vsel %vm1130_vm8, %v2846_v56, 256  ;;  %v1163_v53 = vsel %vm1131_vm9, %v2849_v34, 256  ;;  %v1164_v39 = vsel %vm1132_vm10, %v2852_v63, 256 }
 0x14d   : > { %v1165_v47 = vsel %vm1133_vm11, %v2857_v24, 256  ;;  %v1166_v43 = vsel %vm1134_vm12, %v2860_v18, 256  ;;  %vm3436_vm4 = vcmp.le.f32.partialorder %v2687_v25, %v2914_v38  ;;  %vm3437_vm5 = vcmp.le.f32.partialorder %v2670_v13, %v2914_v38 }
 0x14e   : > { %v1167_v54 = vsel %vm3436_vm4, %v2863_v0, 256  ;;  %v1168_v40 = vsel %vm3437_vm5, %v2866_v5, 256  ;;  %vm3438_vm6 = vcmp.le.f32.partialorder %v2684_v23, %v2914_v38  ;;  %vm3439_vm7 = vcmp.le.f32.partialorder %v2707_v55, %v2914_v38 }
 0x14f   : > { %v1169_v50 = vsel %vm3438_vm6, %v2871_v29, 256  ;;  %v1170_v16 = vsel %vm3439_vm7, %v2874_v19, 256  ;;  %vm3440_vm8 = vcmp.le.f32.partialorder %v2718_v8, %v2914_v38  ;;  %vm3441_vm9 = vcmp.le.f32.partialorder %v2703_v49, %v2914_v38 }
 0x150   : > { %v1171_v25 = vsel %vm3440_vm8, %v2877_v28, 256  ;;  %v1172_v13 = vsel %vm3441_vm9, %v2882_v37, 256  ;;  %vm3442_vm10 = vcmp.le.f32.partialorder %v2715_v3, %v2914_v38  ;;  %vm3443_vm11 = vcmp.le.f32.partialorder %v2736_v21, %v2914_v38 }
 0x151   : > { %v1173_v23 = vsel %vm3442_vm10, %v2885_v35, 256  ;;  %v1174_v55 = vsel %vm3443_vm11, %v2888_v30, 256  ;;  %vm3444_vm12 = vcmp.le.f32.partialorder %v2744_v51, %v2914_v38  ;;  %vm3445_vm4 = vcmp.le.f32.partialorder %v2732_v32, %v2914_v38  ;;  %v3451_v30 = vld [vmem:[#allocation40_spill] sm:$0xff] }
 0x152   : > { %v1175_v8 = vsel %vm3444_vm12, %v2891_v62, 256  ;;  %v1176_v49 = vsel %vm3445_vm4, %v2894_v48, 256  ;;  %vm3446_vm5 = vcmp.le.f32.partialorder %v2741_v45, %v2914_v38  ;;  %vm3447_vm6 = vcmp.le.f32.partialorder %v2763_v12, %v2914_v38  ;;  %v3449_v62 = vld [vmem:[#allocation39_spill] sm:$0xff] }
 0x153   : > { %v1177_v3 = vsel %vm3446_vm5, %v2897_v33, 256  ;;  %v1178_v21 = vsel %vm3447_vm6, %v2900_v14, 256  ;;  %vm3448_vm7 = vcmp.le.f32.partialorder %v2771_v9, %v2914_v38  ;;  %vm3450_vm8 = vcmp.le.f32.partialorder %v2759_v31, %v2914_v38 }
 0x154   : > { %v1179_v51 = vsel %vm3448_vm7, %v2903_v26, 256  ;;  %v1180_v32 = vsel %vm3450_vm8, %v3449_v62, 256  ;;  %vm3452_vm9 = vcmp.le.f32.partialorder %v2768_v2, %v2914_v38  ;;  %vm3453_vm10 = vcmp.le.f32.partialorder %v2788_v1, %v2914_v38  ;;  %v3131_v26 = vpop.permute.xlu1 %1662 }
 0x155   : > { %v1181_v45 = vsel %vm3452_vm9, %v3451_v30, 256  ;;  %v1182_v12 = vsel %vm3453_vm10, %v2912_v46, 256  ;;  %v1183_v9 = vsel %vm1151_vm15, %v2917_v20, 256  ;;  %v1184_v31 = vsel %vm1152_vm1, %v2920_v15, 256  ;;  %v3454_v20 = vld [vmem:[#allocation48_spill] sm:$0xff]  ;;  %v3455_v46 = vld [vmem:[#allocation49_spill] sm:$0xff] }
 0x156   : > { %v1185_v2 = vsel %vm1153_vm2, %v2923_v11, 256  ;;  %v1186_v1 = vsel %vm1154_vm3, %v2926_v6, 256  ;;  %v1187_v44 = vsel %vm1155_vm0, %v2929_v60, 256  ;;  %v1188_v58 = vsel %vm1156_vm13, %v3454_v20, 256  ;;  %v3129_v11 = vpop.permute.xlu0 %1657 }
 0x157   : > { %v1189_v59 = vsel %vm1157_vm14, %v3455_v46, 256  ;;  %vm1190_vm15 = vcmp.lt.s32.totalorder %v1158_v7, %v1162_v42  ;;  %vm1192_vm1 = vcmp.lt.s32.totalorder %v1159_v36, %v1163_v53  ;;  %vm1194_vm2 = vcmp.lt.s32.totalorder %v1160_v52, %v1164_v39 }
 0x158   : > { %vm1196_vm3 = vcmp.lt.s32.totalorder %v1161_v22, %v1165_v47  ;;  %v1191_v61 = vsel %vm1190_vm15, %v1158_v7, %v1162_v42  ;;  %v1193_v6 = vsel %vm1192_vm1, %v1159_v36, %v1163_v53  ;;  %v1195_v4 = vsel %vm1194_vm2, %v1160_v52, %v1164_v39  ;;  %v3135_v39 = vpop.permute.xlu1 %1672 }
 0x159   : > { %v1197_v60 = vsel %vm1196_vm3, %v1161_v22, %v1165_v47  ;;  %vm1198_vm0 = vcmp.lt.s32.totalorder %v1191_v61, %v1166_v43  ;;  %vm1200_vm11 = vcmp.lt.s32.totalorder %v1193_v6, %v1167_v54  ;;  %vm1202_vm13 = vcmp.lt.s32.totalorder %v1195_v4, %v1168_v40 }
 0x15a   : > { %vm1204_vm12 = vcmp.lt.s32.totalorder %v1197_v60, %v1169_v50  ;;  %v1199_v41 = vsel %vm1198_vm0, %v1191_v61, %v1166_v43  ;;  %v1201_v20 = vsel %vm1200_vm11, %v1193_v6, %v1167_v54  ;;  %v1203_v15 = vsel %vm1202_vm13, %v1195_v4, %v1168_v40  ;;  %v3133_v52 = vpop.permute.xlu0 %1667 }
 0x15b   : > { %v1205_v38 = vsel %vm1204_vm12, %v1197_v60, %v1169_v50  ;;  %vm1206_vm14 = vcmp.lt.s32.totalorder %v1199_v41, %v1170_v16  ;;  %vm1208_vm4 = vcmp.lt.s32.totalorder %v1201_v20, %v1171_v25  ;;  %vm1210_vm5 = vcmp.lt.s32.totalorder %v1203_v15, %v1172_v13 }
 0x15c   : > { %vm1212_vm6 = vcmp.lt.s32.totalorder %v1205_v38, %v1173_v23  ;;  %v1207_v46 = vsel %vm1206_vm14, %v1199_v41, %v1170_v16  ;;  %v1209_v30 = vsel %vm1208_vm4, %v1201_v20, %v1171_v25  ;;  %v1211_v7 = vsel %vm1210_vm5, %v1203_v15, %v1172_v13 }
 0x15d   : > { %v1213_v36 = vsel %vm1212_vm6, %v1205_v38, %v1173_v23  ;;  %vm1214_vm7 = vcmp.lt.s32.totalorder %v1207_v46, %v1174_v55  ;;  %vm1216_vm8 = vcmp.lt.s32.totalorder %v1209_v30, %v1175_v8  ;;  %vm1218_vm9 = vcmp.lt.s32.totalorder %v1211_v7, %v1176_v49  ;;  %v3139_v23 = vpop.permute.xlu1 %1682 }
 0x15e   : > { %vm1220_vm10 = vcmp.lt.s32.totalorder %v1213_v36, %v1177_v3  ;;  %v1215_v22 = vsel %vm1214_vm7, %v1207_v46, %v1174_v55  ;;  %v1217_v42 = vsel %vm1216_vm8, %v1209_v30, %v1175_v8  ;;  %v1219_v53 = vsel %vm1218_vm9, %v1211_v7, %v1176_v49  ;;  %v3137_v40 = vpop.permute.xlu0 %1677 }
 0x15f   : > { %v1221_v6 = vsel %vm1220_vm10, %v1213_v36, %v1177_v3  ;;  %vm1222_vm15 = vcmp.lt.s32.totalorder %v1215_v22, %v1178_v21  ;;  %vm1224_vm1 = vcmp.lt.s32.totalorder %v1217_v42, %v1179_v51  ;;  %vm1226_vm2 = vcmp.lt.s32.totalorder %v1219_v53, %v1180_v32 }
 0x160   : > { %vm1228_vm3 = vcmp.lt.s32.totalorder %v1221_v6, %v1181_v45  ;;  %v1223_v60 = vsel %vm1222_vm15, %v1215_v22, %v1178_v21  ;;  %v1225_v20 = vsel %vm1224_vm1, %v1217_v42, %v1179_v51  ;;  %v1227_v47 = vsel %vm1226_vm2, %v1219_v53, %v1180_v32  ;;  %v3460_v53 = vld [vmem:[#allocation6_spill] sm:$0xff] }
 0x161   : > { %v1229_v38 = vsel %vm1228_vm3, %v1221_v6, %v1181_v45  ;;  %vm1230_vm0 = vcmp.lt.s32.totalorder %v1223_v60, %v1182_v12  ;;  %vm1232_vm11 = vcmp.lt.s32.totalorder %v1225_v20, %v1183_v9  ;;  %vm1234_vm13 = vcmp.lt.s32.totalorder %v1227_v47, %v1184_v31  ;;  %v3143_v51 = vpop.permute.xlu1 %1692 }
 0x162   : > { %vm1236_vm12 = vcmp.lt.s32.totalorder %v1229_v38, %v1185_v2  ;;  %v1231_v43 = vsel %vm1230_vm0, %v1223_v60, %v1182_v12  ;;  %v1233_v54 = vsel %vm1232_vm11, %v1225_v20, %v1183_v9  ;;  %v1235_v46 = vsel %vm1234_vm13, %v1227_v47, %v1184_v31  ;;  %v3141_v3 = vpop.permute.xlu0 %1687 }
 0x163   : > { %v1237_v30 = vsel %vm1236_vm12, %v1229_v38, %v1185_v2  ;;  %vm1238_vm14 = vcmp.lt.s32.totalorder %v1231_v43, %v1186_v1  ;;  %vm1240_vm4 = vcmp.lt.s32.totalorder %v1233_v54, %v1187_v44  ;;  %vm1242_vm5 = vcmp.lt.s32.totalorder %v1235_v46, %v1188_v58 }
 0x164   : > { %vm1244_vm6 = vcmp.lt.s32.totalorder %v1237_v30, %v1189_v59  ;;  %v1239_v50 = vsel %vm1238_vm14, %v1231_v43, %v1186_v1  ;;  %v1241_v16 = vsel %vm1240_vm4, %v1233_v54, %v1187_v44  ;;  %v1243_v25 = vsel %vm1242_vm5, %v1235_v46, %v1188_v58  ;;  %v3462_v54 = vld [vmem:[#allocation8_spill] sm:$0xff] }
 0x165   : > { %v1245_v13 = vsel %vm1244_vm6, %v1237_v30, %v1189_v59  ;;  %vm1246_vm7 = vcmp.lt.s32.totalorder %v1239_v50, %v1241_v16  ;;  %v3147_v31 = vpop.permute.xlu1 %1702  ;;  %v2334_v58 = vmov 0.0  }
 0x166   : > { %vm1248_vm8 = vcmp.lt.s32.totalorder %v1243_v25, %v1245_v13  ;;  %v1247_v55 = vsel %vm1246_vm7, %v1239_v50, %v1241_v16  ;;  %v3145_v12 = vpop.permute.xlu0 %1697 }
 0x167   : > { %v1249_v8 = vsel %vm1248_vm8, %v1243_v25, %v1245_v13  ;;  %v3463_v25 = vld [vmem:[#allocation9_spill] sm:$0xff] }
 0x168   : > { %vm1250_vm9 = vcmp.lt.s32.totalorder %v1247_v55, %v1249_v8 }
 0x169   : > { %v1251_v49 = vsel %vm1250_vm9, %v1247_v55, %v1249_v8  ;;  %v3165_v15 = vpop.permute.xlu1 %1712  ;;  %v3464_v55 = vld [vmem:[#allocation10_spill] sm:$0xff] }
 0x16a   : > { %v1252_v21 = vrot.slane %v1251_v49, 4  ;;  %v3151_v44 = vpop.permute.xlu0 %1707 }
 0x16c   : > { %vm1253_vm10 = vcmp.lt.s32.totalorder %v1251_v49, %v1252_v21 }
 0x16d   : > { %v1254_v32 = vsel %vm1253_vm10, %v1251_v49, %v1252_v21  ;;  %v3191_v50 = vpop.permute.xlu1 %1722 }
 0x16e   : > { %v1255_v45 = vrot.slane %v1254_v32, 2  ;;  %v3184_v38 = vpop.permute.xlu0 %1717 }
 0x170   : > { %vm1256_vm15 = vcmp.lt.s32.totalorder %v1254_v32, %v1255_v45 }
 0x171   : > { %v1257_v9 = vsel %vm1256_vm15, %v1254_v32, %v1255_v45 }
 0x172   : > { %v1258_v2 = vrot.slane %v1257_v9, 1 }
 0x174   : > { %vm1259_vm1 = vcmp.lt.s32.totalorder %v1257_v9, %v1258_v2 }
 0x175   : > { %v3149_v1 = vsel %vm1259_vm1, %v1257_v9, %v1258_v2  ;;  %v3465_v2 = vld [vmem:[#allocation11_spill] sm:$0xff] }
 0x176   : > { %vm1263_vm2 = vcmp.eq.s32.totalorder %v2838_v57, %v3149_v1  ;;  %vm1261_vm3 = vcmp.eq.s32.totalorder %v2832_v17, %v3149_v1  ;;  %vm1264_vm0 = vcmp.eq.s32.totalorder %v2841_v10, %v3149_v1  ;;  %vm1262_vm11 = vcmp.eq.s32.totalorder %v2835_v27, %v3149_v1  ;;  %v3457_v57 = vld [vmem:[#allocation3_spill] sm:$0xff]  ;;  %v3458_v17 = vld [vmem:[#allocation4_spill] sm:$0xff]  ;;  %v3459_v27 = vld [vmem:[#allocation5_spill] sm:$0xff] }
 0x177   : > { %v2089_v59 = vsel %vm1263_vm2, 1.0, %v2334_v58  ;;  %v2087_v61 = vsel %vm1261_vm3, 1.0, %v2334_v58  ;;  %v2090_v4 = vsel %vm1264_vm0, 1.0, %v2334_v58  ;;  %v2088_v41 = vsel %vm1262_vm11, 1.0, %v2334_v58 }
 0x178   : > { %v1588_v7 = vmul.f32 %v3457_v57, %v2089_v59  ;;  %v1586_v36 = vmul.f32 %v2087_v61, %v3458_v17  ;;  %v1815_v10 = vmul.f32 %v2087_v61, %v3129_v11  ;;  %v1817_v22 = vmul.f32 %v2089_v59, %v3133_v52  ;;  %v3466_v61 = vld [vmem:[#allocation12_spill] sm:$0xff]  ;;  %v3467_v17 = vld [vmem:[#allocation13_spill] sm:$0xff] }
 0x179   : > { %v1589_v42 = vmul.f32 %v3459_v27, %v2090_v4  ;;  %v1587_v6 = vmul.f32 %v2088_v41, %v3460_v53  ;;  %v1816_v60 = vmul.f32 %v2088_v41, %v3131_v26  ;;  %vm1267_vm13 = vcmp.eq.s32.totalorder %v2852_v63, %v3149_v1  ;;  %v3461_v63 = vld [vmem:[#allocation7_spill] sm:$0xff] }
 0x17a   : > { %vm1265_vm12 = vcmp.eq.s32.totalorder %v2846_v56, %v3149_v1  ;;  %vm1268_vm14 = vcmp.eq.s32.totalorder %v2857_v24, %v3149_v1  ;;  %vm1266_vm4 = vcmp.eq.s32.totalorder %v2849_v34, %v3149_v1  ;;  %v2093_v20 = vsel %vm1267_vm13, 1.0, %v2334_v58 }
 0x17b   : > { %v1618_v11 = vadd.f32 %v1587_v6, %v1586_v36  ;;  %v1847_v52 = vadd.f32 %v1816_v60, %v1815_v10  ;;  %v2091_v47 = vsel %vm1265_vm12, 1.0, %v2334_v58  ;;  %v1818_v26 = vmul.f32 %v2090_v4, %v3135_v39  ;;  %v3215_v36 = vpop.permute.xlu1 %1732  ;;  %v3468_v10 = vld [vmem:[#allocation14_spill] sm:$0xff]  ;;  %v3469_v60 = vld [vmem:[#allocation15_spill] sm:$0xff] }
 0x17c   : > { %v1592_v43 = vmul.f32 %v3461_v63, %v2093_v20  ;;  %v1590_v56 = vmul.f32 %v2091_v47, %v3462_v54  ;;  %v2094_v24 = vsel %vm1268_vm14, 1.0, %v2334_v58  ;;  %v2092_v34 = vsel %vm1266_vm4, 1.0, %v2334_v58 }
 0x17d   : > { %v1619_v46 = vadd.f32 %v1618_v11, %v1588_v7  ;;  %v1848_v30 = vadd.f32 %v1847_v52, %v1817_v22  ;;  %v1819_v16 = vmul.f32 %v2091_v47, %v3137_v40  ;;  %v1593_v13 = vmul.f32 %v3463_v25, %v2094_v24  ;;  %v3470_v52 = vld [vmem:[#allocation16_spill] sm:$0xff] }
 0x17e   : > { %v1591_v8 = vmul.f32 %v2092_v34, %v3464_v55  ;;  %vm1271_vm5 = vcmp.eq.s32.totalorder %v2866_v5, %v3149_v1  ;;  %vm1269_vm6 = vcmp.eq.s32.totalorder %v2860_v18, %v3149_v1  ;;  %vm1272_vm7 = vcmp.eq.s32.totalorder %v2871_v29, %v3149_v1  ;;  %v3208_v5 = vpop.permute.xlu0 %1727 }
 0x17f   : > { %v1620_v49 = vadd.f32 %v1619_v46, %v1589_v42  ;;  %v1849_v39 = vadd.f32 %v1848_v30, %v1818_v26  ;;  %v2097_v21 = vsel %vm1271_vm5, 1.0, %v2334_v58  ;;  %v2095_v32 = vsel %vm1269_vm6, 1.0, %v2334_v58  ;;  %v3240_v46 = vpop.permute.xlu1 %1742 }
 0x180   : > { %vm1270_vm8 = vcmp.eq.s32.totalorder %v2863_v0, %v3149_v1  ;;  %v1820_v9 = vmul.f32 %v2092_v34, %v3139_v23  ;;  %v1596_v59 = vmul.f32 %v3465_v2, %v2097_v21  ;;  %v1594_v18 = vmul.f32 %v2095_v32, %v3466_v61  ;;  %v3477_v2 = vld [vmem:[#allocation21_spill] sm:$0xff] }
 0x181   : > { %v1621_v40 = vadd.f32 %v1620_v49, %v1590_v56  ;;  %v1850_v45 = vadd.f32 %v1849_v39, %v1819_v16  ;;  %v2098_v4 = vsel %vm1272_vm7, 1.0, %v2334_v58  ;;  %v2096_v41 = vsel %vm1270_vm8, 1.0, %v2334_v58  ;;  %v3472_v56 = vld [vmem:[#allocation17_spill] sm:$0xff] }
 0x182   : > { %v1821_v57 = vmul.f32 %v2093_v20, %v3141_v3  ;;  %v1597_v0 = vmul.f32 %v3467_v17, %v2098_v4  ;;  %v1822_v23 = vmul.f32 %v2094_v24, %v3143_v51  ;;  %v1595_v22 = vmul.f32 %v2096_v41, %v3468_v10  ;;  %v3476_v39 = vld [vmem:[#allocation37_spill] sm:$0xff] }
 0x183   : > { %v1622_v29 = vadd.f32 %v1621_v40, %v1591_v8  ;;  %v1851_v7 = vadd.f32 %v1850_v45, %v1820_v9  ;;  %vm1275_vm9 = vcmp.eq.s32.totalorder %v2882_v37, %v3149_v1  ;;  %vm1273_vm10 = vcmp.eq.s32.totalorder %v2874_v19, %v3149_v1  ;;  %v1738_v37 = vpop.permute.xlu0 %1737  ;;  %v3475_v8 = vld [vmem:[#allocation20_spill] sm:$0xff] }
 0x184   : > { %v2101_v3 = vsel %vm1275_vm9, 1.0, %v2334_v58  ;;  %v2099_v53 = vsel %vm1273_vm10, 1.0, %v2334_v58  ;;  %v1823_v6 = vmul.f32 %v2095_v32, %v3145_v12  ;;  %vm1276_vm15 = vcmp.eq.s32.totalorder %v2885_v35, %v3149_v1  ;;  %v3471_v12 = vld [vmem:[#allocation36_spill] sm:$0xff] }
 0x185   : > { %v1623_v27 = vadd.f32 %v1622_v29, %v1592_v43  ;;  %v1852_v42 = vadd.f32 %v1851_v7, %v1821_v57  ;;  %v1600_v11 = vmul.f32 %v3469_v60, %v2101_v3  ;;  %v1598_v51 = vmul.f32 %v2099_v53, %v3470_v52  ;;  %v3480_v29 = vld [vmem:[#allocation38_spill] sm:$0xff]  ;;  %v3483_v60 = vld [vmem:[#allocation25_spill] sm:$0xff] }
 0x186   : > { %vm1274_vm1 = vcmp.eq.s32.totalorder %v2877_v28, %v3149_v1  ;;  %v2102_v19 = vsel %vm1276_vm15, 1.0, %v2334_v58  ;;  %vm1279_vm2 = vcmp.eq.s32.totalorder %v2894_v48, %v3149_v1  ;;  %vm1277_vm3 = vcmp.eq.s32.totalorder %v3471_v12, %v3149_v1  ;;  %v3473_v28 = vld [vmem:[#allocation18_spill] sm:$0xff]  ;;  %v3486_v12 = vld [vmem:[#allocation41_spill] sm:$0xff] }
 0x187   : > { %v1624_v20 = vadd.f32 %v1623_v27, %v1593_v13  ;;  %v1853_v47 = vadd.f32 %v1852_v42, %v1822_v23  ;;  %v2100_v26 = vsel %vm1274_vm1, 1.0, %v2334_v58  ;;  %v1824_v54 = vmul.f32 %v2096_v41, %v3147_v31  ;;  %v3474_v13 = vld [vmem:[#allocation19_spill] sm:$0xff]  ;;  %v1748_v45 = vpop.permute.xlu0 %1747 }
 0x188   : > { %v1601_v35 = vmul.f32 %v3472_v56, %v2102_v19  ;;  %v1599_v30 = vmul.f32 %v2100_v26, %v3473_v28  ;;  %v3244_v24 = vsel %vm1279_vm2, 1.0, %v2334_v58  ;;  %v2103_v34 = vsel %vm1277_vm3, 1.0, %v2334_v58  ;;  %v3487_v28 = vld [vmem:[#allocation28_spill] sm:$0xff] }
 0x189   : > { %v1625_v63 = vadd.f32 %v1624_v20, %v1594_v18  ;;  %v1854_v43 = vadd.f32 %v1853_v47, %v1823_v6  ;;  %v1825_v48 = vmul.f32 %v2097_v21, %v3151_v44  ;;  %v3250_v55 = vmul.f32 %v3474_v13, %v3244_v24  ;;  %v3484_v20 = vld [vmem:[#allocation26_spill] sm:$0xff] }
 0x18a   : > { %v1826_v31 = vmul.f32 %v2098_v4, %v3165_v15  ;;  %v1602_v49 = vmul.f32 %v2103_v34, %v3475_v8  ;;  %vm1280_vm0 = vcmp.eq.s32.totalorder %v2897_v33, %v3149_v1  ;;  %vm1278_vm11 = vcmp.eq.s32.totalorder %v3476_v39, %v3149_v1  ;;  %v3478_v15 = vld [vmem:[#allocation22_spill] sm:$0xff]  ;;  %v1753_v33 = vpop.permute.xlu1 %1752 }
 0x18b   : > { %v1626_v16 = vadd.f32 %v1625_v63, %v1595_v22  ;;  %v1855_v25 = vadd.f32 %v1854_v43, %v1824_v54  ;;  %v2106_v44 = vsel %vm1280_vm0, 1.0, %v2334_v58  ;;  %v2104_v21 = vsel %vm1278_vm11, 1.0, %v2334_v58 }
 0x18c   : > { %v1827_v9 = vmul.f32 %v2099_v53, %v3184_v38  ;;  %v3262_v61 = vmul.f32 %v3477_v2, %v2106_v44  ;;  %v1603_v18 = vmul.f32 %v2104_v21, %v3478_v15  ;;  %vm1283_vm13 = vcmp.eq.s32.totalorder %v3449_v62, %v3149_v1  ;;  %v3479_v38 = vld [vmem:[#allocation40_spill] sm:$0xff]  ;;  %v3481_v62 = vld [vmem:[#allocation23_spill] sm:$0xff] }
 0x18d   : > { %v1627_v32 = vadd.f32 %v1626_v16, %v1596_v59  ;;  %v1856_v40 = vadd.f32 %v1855_v25, %v1825_v48  ;;  %vm1281_vm12 = vcmp.eq.s32.totalorder %v2900_v14, %v3149_v1  ;;  %v3270_v59 = vsel %vm1283_vm13, 1.0, %v2334_v58  ;;  %v3482_v14 = vld [vmem:[#allocation24_spill] sm:$0xff]  ;;  %v3489_v25 = vld [vmem:[#allocation45_spill] sm:$0xff] }
 0x18e   : > { %v2107_v57 = vsel %vm1281_vm12, 1.0, %v2334_v58  ;;  %vm1284_vm14 = vcmp.eq.s32.totalorder %v3479_v38, %v3149_v1  ;;  %vm1282_vm4 = vcmp.eq.s32.totalorder %v3480_v29, %v3149_v1  ;;  %v3280_v23 = vmul.f32 %v3481_v62, %v3270_v59  ;;  %v1763_v54 = vpop.permute.xlu1 %1762  ;;  %v3496_v62 = vld [vmem:[#allocation32_spill] sm:$0xff] }
 0x18f   : > { %v1628_v4 = vadd.f32 %v1627_v32, %v1597_v0  ;;  %v1857_v41 = vadd.f32 %v1856_v40, %v1826_v31  ;;  %v1828_v0 = vmul.f32 %v2100_v26, %v3191_v50  ;;  %v1606_v10 = vmul.f32 %v2107_v57, %v3482_v14  ;;  %v1758_v50 = vpop.permute.xlu0 %1757  ;;  %v3485_v26 = vld [vmem:[#allocation44_spill] sm:$0xff]  ;;  %v3493_v32 = vld [vmem:[#allocation30_spill] sm:$0xff] }
 0x190   : > { %v3284_v22 = vsel %vm1284_vm14, 1.0, %v2334_v58  ;;  %v2108_v27 = vsel %vm1282_vm4, 1.0, %v2334_v58  ;;  %v1829_v42 = vmul.f32 %v2101_v3, %v3208_v5  ;;  %vm1287_vm5 = vcmp.eq.s32.totalorder %v3485_v26, %v3149_v1  ;;  %v3501_v26 = vld [vmem:[#allocation35_spill] sm:$0xff] }
 0x191   : > { %v1629_v7 = vadd.f32 %v1628_v4, %v1598_v51  ;;  %v1858_v17 = vadd.f32 %v1857_v41, %v1827_v9  ;;  %v3290_v52 = vmul.f32 %v3483_v60, %v3284_v22  ;;  %v1830_v51 = vmul.f32 %v2102_v19, %v3215_v36  ;;  %v3488_v19 = vld [vmem:[#allocation29_spill] sm:$0xff]  ;;  %v3494_v9 = vld [vmem:[#allocation2_spill] sm:$0xff]  ;;  %v3495_v4 = vld [vmem:[#allocation31_spill] sm:$0xff] }
 0x192   : > { %v1607_v47 = vmul.f32 %v2108_v27, %v3484_v20  ;;  %vm1285_vm6 = vcmp.eq.s32.totalorder %v3486_v12, %v3149_v1  ;;  %v3299_v5 = vsel %vm1287_vm5, 1.0, %v2334_v58  ;;  %v1831_v56 = vmul.f32 %v2103_v34, %v1738_v37  ;;  %v3491_v37 = vld [vmem:[#allocation48_spill] sm:$0xff]  ;;  %v3492_v34 = vld [vmem:[#allocation46_spill] sm:$0xff]  ;;  %v1773_v14 = vpop.permute.xlu1 %1772 }
 0x193   : > { %v1630_v53 = vadd.f32 %v1629_v7, %v1599_v30  ;;  %v1859_v6 = vadd.f32 %v1858_v17, %v1828_v0  ;;  %v2111_v3 = vsel %vm1285_vm6, 1.0, %v2334_v58  ;;  %v3304_v36 = vmul.f32 %v3487_v28, %v3299_v5  ;;  %v1768_v15 = vpop.permute.xlu0 %1767 }
 0x194   : > { %v1610_v30 = vmul.f32 %v2111_v3, %v3488_v19  ;;  %vm1288_vm7 = vcmp.eq.s32.totalorder %v3489_v25, %v3149_v1  ;;  %vm1291_vm9 = vcmp.eq.s32.totalorder %v3491_v37, %v3149_v1  ;;  %vm1289_vm10 = vcmp.eq.s32.totalorder %v3492_v34, %v3149_v1 }
 0x195   : > { %v1631_v63 = vadd.f32 %v1630_v53, %v1600_v11  ;;  %v1860_v43 = vadd.f32 %v1859_v6, %v1829_v42  ;;  %v3490_v11 = vld [vmem:[#allocation43_spill] sm:$0xff]  ;;  %v2114_v13 = vsel %vm1288_vm7, 1.0, %v2334_v58  ;;  %v1886_v2 = vrot.slane %v3494_v9, 4  ;;  %v3498_v53 = vld [vmem:[#allocation49_spill] sm:$0xff] }
 0x196   : > { %vm1286_vm8 = vcmp.eq.s32.totalorder %v3490_v11, %v3149_v1  ;;  %v1613_v40 = vmul.f32 %v3493_v32, %v2114_v13  ;;  %v2117_v38 = vsel %vm1291_vm9, 1.0, %v2334_v58  ;;  %v2115_v29 = vsel %vm1289_vm10, 1.0, %v2334_v58  ;;  %v3499_v6 = vld [vmem:[#allocation47_spill] sm:$0xff] }
 0x197   : > { %v1632_v48 = vadd.f32 %v1631_v63, %v1601_v35  ;;  %v1861_v16 = vadd.f32 %v1860_v43, %v1830_v51  ;;  %v2112_v31 = vsel %vm1286_vm8, 1.0, %v2334_v58  ;;  %v1832_v35 = vmul.f32 %v2104_v21, %v3240_v46  ;;  %v3497_v46 = vld [vmem:[#allocation33_spill] sm:$0xff] }
 0x198   : > { %v1611_v41 = vmul.f32 %v2112_v31, %v3495_v4  ;;  %v1833_v7 = vmul.f32 %v3244_v24, %v1748_v45  ;;  %v1834_v42 = vmul.f32 %v2106_v44, %v1753_v33  ;;  %v1614_v21 = vmul.f32 %v2115_v29, %v3497_v46  ;;  %v3500_v45 = vld [vmem:[#allocation34_spill] sm:$0xff] }
 0x199   : > { %v1633_v8 = vadd.f32 %v1632_v48, %v1602_v49  ;;  %v1862_v39 = vadd.f32 %v1861_v16, %v1831_v56  ;;  %v1616_v49 = vmul.f32 %v3496_v62, %v2117_v38  ;;  %vm1292_vm15 = vcmp.eq.s32.totalorder %v3498_v53, %v3149_v1  ;;  %v1778_v56 = vpop.permute.xlu0 %1777 }
 0x19a   : > { %vm1290_vm1 = vcmp.eq.s32.totalorder %v3499_v6, %v3149_v1  ;;  %v2118_v20 = vsel %vm1292_vm15, 1.0, %v2334_v58  ;;  %v1835_v33 = vmul.f32 %v2107_v57, %v1758_v50  ;;  %v1887_v43 = vadd.f32 %v1886_v2, %v3494_v9 }
 0x19b   : > { %v1634_v17 = vadd.f32 %v1633_v8, %v1603_v18  ;;  %v1863_v0 = vadd.f32 %v1862_v39, %v1832_v35  ;;  %v2116_v24 = vsel %vm1290_vm1, 1.0, %v2334_v58  ;;  %v1617_v18 = vmul.f32 %v3500_v45, %v2118_v20 }
 0x19c   : > { %v1615_v12 = vmul.f32 %v2116_v24, %v3501_v26  ;;  %v1836_v19 = vmul.f32 %v2108_v27, %v1763_v54  ;;  %v1837_v48 = vmul.f32 %v3270_v59, %v1768_v15  ;;  %v1888_v58 = vrot.slane %v1887_v43, 2 }
 0x19d   : > { %v1635_v60 = vadd.f32 %v1634_v17, %v3250_v55  ;;  %v1864_v51 = vadd.f32 %v1863_v0, %v1833_v7  ;;  %v1783_v55 = vpop.permute.xlu1 %1782  ;;  %v1838_v11 = vmul.f32 %v3284_v22, %v1773_v14  ;;  %v1839_v50 = vmul.f32 %v2111_v3, %v1778_v56 }
 0x19e   : > { %v1889_v39 = vadd.f32 %v1888_v58, %v1887_v43  ;;  %v1840_v54 = vmul.f32 %v2112_v31, %v1783_v55  ;;  %vm3503_vm2 = vcmask 1040384  }
 0x19f   : > { %v1636_v44 = vadd.f32 %v1635_v60, %v3262_v61  ;;  %v1865_v63 = vadd.f32 %v1864_v51, %v1834_v42  ;;  %v1788_v61 = vpop.permute.xlu0 %1787 }
 0x1a0   : > { %v1841_v59 = vmul.f32 %v3299_v5, %v1788_v61  ;;  %v1890_v9 = vrot.slane %v1889_v39, 1 }
 0x1a1   : > { %v1637_v28 = vadd.f32 %v1636_v44, %v1606_v10  ;;  %v1866_v1 = vadd.f32 %v1865_v63, %v1835_v33  ;;  %v1793_v10 = vpop.permute.xlu1 %1792 }
 0x1a2   : > { %v1842_v22 = vmul.f32 %v2114_v13, %v1793_v10  ;;  %v1891_v17 = vadd.f32 %v1890_v9, %v1889_v39 }
 0x1a3   : > { %v1638_v16 = vadd.f32 %v1637_v28, %v1607_v47  ;;  %v1867_v25 = vadd.f32 %v1866_v1, %v1836_v19  ;;  %v1798_v2 = vpop.permute.xlu0 %1797  ;;  %v3502_v28 = vld [vmem:[#allocation42_spill] sm:$0xff] }
 0x1a5   : > { %v1639_v37 = vadd.f32 %v1638_v16, %v3280_v23  ;;  %v1868_v34 = vadd.f32 %v1867_v25, %v1837_v48  ;;  %v1803_v4 = vpop.permute.xlu1 %1802 }
 0x1a7   : > { %v1640_v57 = vadd.f32 %v1639_v37, %v3290_v52  ;;  %v1869_v8 = vadd.f32 %v1868_v34, %v1838_v11  ;;  %v1843_v52 = vmul.f32 %v2115_v29, %v1798_v2  ;;  %v1808_v14 = vpop.permute.xlu0 %1807 }
 0x1a8   : > { %v1845_v31 = vmul.f32 %v2117_v38, %v1808_v14 }
 0x1a9   : > { %v1641_v35 = vadd.f32 %v1640_v57, %v1610_v30  ;;  %v1870_v27 = vadd.f32 %v1869_v8, %v1839_v50  ;;  %v1844_v30 = vmul.f32 %v2116_v24, %v1803_v4  ;;  %v1813_v46 = vpop.permute.xlu1 %1812 }
 0x1aa   : > { %v1846_v53 = vmul.f32 %v2118_v20, %v1813_v46 }
 0x1ab   : > { %v1642_v47 = vadd.f32 %v1641_v35, %v1611_v41  ;;  %v1871_v32 = vadd.f32 %v1870_v27, %v1840_v54  ;;  %v1892_v41 = vmax.f32 %v1891_v17, 1e-12 }
 0x1ad   : > { %v1643_v23 = vadd.f32 %v1642_v47, %v3304_v36  ;;  %v1872_v15 = vadd.f32 %v1871_v32, %v1841_v59  ;;  %2288 = vrsqrt.f32 %v1892_v41 }
 0x1af   : > { %v1644_v7 = vadd.f32 %v1643_v23, %v1613_v40  ;;  %v1873_v3 = vadd.f32 %v1872_v15, %v1842_v22 }
 0x1b1   : > { %v1645_v0 = vadd.f32 %v1644_v7, %v1614_v21  ;;  %v1874_v62 = vadd.f32 %v1873_v3, %v1843_v52 }
 0x1b3   : > { %v1646_v42 = vadd.f32 %v1645_v0, %v1615_v12  ;;  %v1875_v5 = vadd.f32 %v1874_v62, %v1844_v30 }
 0x1b5   : > { %v1647_v6 = vadd.f32 %v1646_v42, %v1616_v49  ;;  %v1876_v13 = vadd.f32 %v1875_v5, %v1845_v31 }
 0x1b7   : > { %v1648_v60 = vadd.f32 %v1647_v6, %v1617_v18  ;;  %v1877_v36 = vadd.f32 %v1876_v13, %v1846_v53  ;;  %v2289_v33 = vpop.eup %2288 }
 0x1b9   : > { %v1649_v51 = vrot.slane %v1648_v60, 4  ;;  %v1878_v40 = vrot.slane %v1877_v36, 4 }
 0x1bb   : > { %v1650_v29 = vadd.f32 %v1649_v51, %v1648_v60  ;;  %v1879_v45 = vadd.f32 %v1878_v40, %v1877_v36 }
 0x1bd   : > { %v1651_v21 = vrot.slane %v1650_v29, 2  ;;  %v1880_v26 = vrot.slane %v1879_v45, 2 }
 0x1bf   : > { %v1652_v24 = vadd.f32 %v1651_v21, %v1650_v29  ;;  %v1881_v44 = vadd.f32 %v1880_v26, %v1879_v45 }
 0x1c1   : > { %v1653_v38 = vrot.slane %v1652_v24, 1  ;;  %v1882_v12 = vrot.slane %v1881_v44, 1 }
 0x1c3   : > { %v1654_v63 = vadd.f32 %v1653_v38, %v1652_v24  ;;  %v1883_v43 = vadd.f32 %v1882_v12, %v1881_v44 }
 0x1c5   : > { %v1894_v20 = vmax.f32 %v1883_v43, 1e-06  ;;  %v1896_v49 = vmul.f32 %v2289_v33, %v1654_v63 }
 0x1c7   : > { %2290 = vrcp.f32 %v1894_v20 }
 0x1d1   : > { %v2291_v18 = vpop.eup %2290 }
 0x1d2   : > { %v1897_v56 = vmul.f32 %v2291_v18, %v1896_v49 }
 0x1d4   : > { %v1898_v1 = vsel %vm3503_vm2, %v3502_v28, %v1897_v56 }
 0x1d5   : > { %1899 = vst [vmem:[%s393_s11] sm:$0x3] %v1898_v1 }
 0x1d6 PF: > { %s16_s25 = sadd.s32 1, %s2330_s25   ;;  %s3504_s21 = smov %s2322_s23 }
 0x1d7   : > { %p13_p7 = scmp.ge.s32.totalorder %s16_s25, 6   ;;  %s3505_s22 = smov %s2326_s24 }
 0x1d8   : > { %s3506_s23 = smov %s3509_s26  ;;  %s3507_s24 = smov %s3513_s27 }
 0x1d9   :  { %15 = sbr.rel (!%p13_p7) target bundleno = 3 (0x3), region = 89 }

</bundles_post_ra>
